<compile_context>
chip_gen: v7x
topology: tpu7x:2x2x1
jax: 0.10.0
libtpu: 0.0.40
codegen_flags: <defaults>
</compile_context>

<pallas_src>
import functools

import jax
import jax.numpy as jnp
from jax.experimental import pallas as pl
from jax.experimental.pallas import tpu as pltpu

DIM = 64          # conf.dim (fixed by MLP = Linear(64*3, 1024))
HIDDEN = 1024
HC = 256          # hidden-dim chunk width for the MLP
TEMPERATURE = 0.2
INV_T = 1.0 / TEMPERATURE


# --------------------------------------------------------------------------
# Pallas kernel: mutual-information score, path attention pooling, and the
# MLP (Linear(192,1024) + ReLU + Linear(1024,1)) + sigmoid.
# --------------------------------------------------------------------------
def _judge_kernel(path3d_ref, start_ref, end_ref,
                  w1_ref, b1_ref, w2t_ref, b2_ref, out_ref):
    path3d = path3d_ref[...]            # (bb, N, D) f32
    start = start_ref[...]              # (bb, D)    f32
    end = end_ref[...]                  # (bb, D)    f32
    bb, N, D = path3d.shape
    H = w1_ref.shape[1]

    # ---- MutualInformation(path3d): per-sample mi_score (bb, 1) ----
    # normed rows have unit L2 norm, so pos_scores == exp(1/T) exactly:
    #   mi = -sum_n log(exp(1/T) / ttl_n) = sum_n log(ttl_n) - N/T
    # TODO(synk): no epsilon in the norm (matches the PyTorch module); an
    # all-zero path row would produce NaN here and in the reference alike.
    sumsq = jnp.sum(path3d * path3d, axis=2, keepdims=True)               # (bb,N,1)
    normed = path3d * jax.lax.rsqrt(sumsq)                                # EUP rsqrt
    # bf16 operands + f32 accumulate: sim in [-1,1], avoids f32 MXU emulation.
    n16 = normed.astype(jnp.bfloat16)
    sim = jnp.einsum('bnd,bmd->bnm', n16, n16,
                     preferred_element_type=jnp.float32)                  # (bb,N,N)
    ttl = jnp.sum(jnp.exp(sim * INV_T), axis=2)                           # (bb,N)
    mi = jnp.sum(jnp.log(ttl), axis=1, keepdims=True) - (N * INV_T)       # (bb,1)

    # ---- path attention pooling (f32 on VPU/EUP) ----
    # TODO(synk): unstabilized softmax (matches the reference exp/sum exactly).
    x = jnp.exp(jnp.sum(path3d * start[:, None, :], axis=2, keepdims=True))  # (bb,N,1)
    attn = x / jnp.sum(x, axis=1, keepdims=True)
    pooled = jnp.mean(path3d * attn, axis=1)                              # (bb,D)

    # ---- MLP, split-K + hidden-dim chunking ----
    # feat = [start | pooled | end] is never concatenated: per hidden chunk we
    # accumulate three K=64 bf16 dots (rows 0:D, D:2D, 2D:3D of W1), add the
    # bias chunk, ReLU, multiply by the matching w2 chunk and lane-reduce into
    # a (bb,1) accumulator.  The (bb, H) f32 hidden activation never exists.
    s16 = start.astype(jnp.bfloat16)
    p16 = pooled.astype(jnp.bfloat16)
    e16 = end.astype(jnp.bfloat16)
    hc = HC if H % HC == 0 else H
    acc = jnp.zeros((bb, 1), jnp.float32)
    for c in range(H // hc):            # static unroll -> static, aligned lane slices
        lo, hi = c * hc, (c + 1) * hc
        h = jnp.dot(s16, w1_ref[0:D, lo:hi], preferred_element_type=jnp.float32)
        h = h + jnp.dot(p16, w1_ref[D:2 * D, lo:hi],
                        preferred_element_type=jnp.float32)
        h = h + jnp.dot(e16, w1_ref[2 * D:3 * D, lo:hi],
                        preferred_element_type=jnp.float32)
        h = jnp.maximum(h + b1_ref[:, lo:hi], 0.0)                        # (bb,hc)
        acc = acc + jnp.sum(h * w2t_ref[:, lo:hi], axis=1, keepdims=True)
    logit = jax.nn.sigmoid(acc + b2_ref[0, 0])                            # (bb,1)

    # single merged output store: col 0 = sigmoid(MLP), col 1 = mi_score
    out_ref[...] = jnp.concatenate([logit, mi], axis=1)


def _block_vmem_estimate(bb, N, D):
    # rough per-block live bytes: input (double-buffered) + normed/exp temps +
    # sim matrix + MLP chunk temps.
    return (2 * bb * N * D * 4
            + 2 * bb * N * D * 4
            + bb * N * N * 4
            + 4 * bb * HC * 4)


def _pick_block_b(Bp, N, D):
    """Bp is a multiple of 8.  Choose the largest block that fits the VMEM
    budget, preferring >= 2 grid steps so both v7x TensorCores get work."""
    budget = 12 << 20
    fitting = [bb for bb in (512, 256, 128, 64, 32, 16, 8)
               if Bp % bb == 0 and _block_vmem_estimate(bb, N, D) <= budget]
    if not fitting:
        return 8                     # TODO(synk): very large N; still minimal block
    for bb in fitting:               # largest-first
        if Bp // bb >= 2:
            return bb
    return fitting[0]


def _judge_core(path3d, start, end, w1, b1, w2, b2):
    B, N, D = path3d.shape
    H = w1.shape[1]

    # pad batch to a multiple of 8 (safe pad values keep everything finite;
    # padded rows are sliced away below and never mix with real rows).
    Bp = ((B + 7) // 8) * 8
    if Bp != B:
        pad = Bp - B
        path3d = jnp.pad(path3d, ((0, pad), (0, 0), (0, 0)), constant_values=1.0)
        start = jnp.pad(start, ((0, pad), (0, 0)))
        end = jnp.pad(end, ((0, pad), (0, 0)))

    bb = _pick_block_b(Bp, N, D)
    nb = Bp // bb

    w1_bf16 = w1.astype(jnp.bfloat16)                 # halves W1 DMA, bf16 MXU
    w2t = w2.reshape(1, H).astype(jnp.float32)        # lane-dense row for VPU path
    b2s = b2.reshape(1, 1).astype(jnp.float32)        # scalar -> SMEM

    weight_bytes = 2 * (3 * D * H * 2 + H * 4 + H * 4)
    vmem_limit = int(min(48 << 20,
                         max(32 << 20,
                             2 * _block_vmem_estimate(bb, N, D) + weight_bytes)))

    # TODO(synk): if the path3d HBM round trip shows up in profiles, fuse the
    # history_embs pairing + mean into this kernel via a (bb,A1,A2,T,D) BlockSpec.
    fused = pl.pallas_call(
        _judge_kernel,
        out_shape=jax.ShapeDtypeStruct((Bp, 2), jnp.float32),
        grid=(nb,),
        in_specs=[
            pl.BlockSpec((bb, N, D), lambda i: (i, 0, 0)),
            pl.BlockSpec((bb, D), lambda i: (i, 0)),
            pl.BlockSpec((bb, D), lambda i: (i, 0)),
            pl.BlockSpec((3 * D, H), lambda i: (0, 0)),
            pl.BlockSpec((1, H), lambda i: (0, 0)),
            pl.BlockSpec((1, H), lambda i: (0, 0)),
            pl.BlockSpec((1, 1), lambda i: (0, 0),
                         memory_space=pltpu.MemorySpace.SMEM),
        ],
        out_specs=pl.BlockSpec((bb, 2), lambda i: (i, 0)),
        compiler_params=pltpu.CompilerParams(
            dimension_semantics=("parallel",),
            vmem_limit_bytes=vmem_limit),
    )(path3d, start, end, w1_bf16, b1, w2t, b2s)

    return fused[:B, 0:1], fused[:B, 1:2]             # logit, mi_score


# --------------------------------------------------------------------------
# Glue (reshapes / means / loss assembly) — fully jitted so the preprocessing
# of history_embs fuses and the dead paths_emb mean is gone entirely.
# --------------------------------------------------------------------------
@functools.partial(jax.jit,
                   static_argnames=("use_ind_loss", "use_rel_loss", "dim"))
def judge_forward(paths_emb, label, start_embeds, end_embeds, history_embs,
                  relavance, params, sim_decay, rel_decay,
                  use_ind_loss=True, use_rel_loss=True, dim=DIM):
    w1, b1, w2, b2 = params
    B = paths_emb.shape[0]
    P = paths_emb.shape[2]          # only the shape of paths_emb2 was ever used

    start = start_embeds.reshape(B, -1, 1, dim)[:, 0, 0, :]                # (B,D)
    end = end_embeds.reshape(B, -1, 1, dim)[:, 0, 0, :]                    # (B,D)

    hist = history_embs[:, :, :, 1:, :]                                    # (B,A1,A2,T-1,D)
    prod = hist[:, :, :, 0::2, :] * hist[:, :, :, 1::2, :]                 # (B,A1,A2,K,D)
    path3d = jnp.mean(prod, axis=(1, 3))                                   # (B,A2,D)

    relv = relavance.reshape(B, P, -1)

    logit, mi_score = _judge_core(path3d.astype(jnp.float32),
                                  start.astype(jnp.float32),
                                  end.astype(jnp.float32),
                                  w1, b1, w2, b2)

    p = jnp.concatenate([logit, 1.0 - logit], axis=1)                      # (B,2)

    # CrossEntropyLoss on p (treated as logits, like torch.nn.CrossEntropyLoss)
    logp = jax.nn.log_softmax(p, axis=1)
    loss = -jnp.mean(logp[jnp.arange(B), label])
    if use_ind_loss:
        loss = loss + sim_decay * (jnp.sum(mi_score) / B)
    if use_rel_loss:
        rel = jnp.mean(relv, axis=1)                                       # (B,R)
        loss = loss + rel_decay * jnp.mean(-jnp.log(jax.nn.sigmoid(rel)))
    return p, loss


# Pure-JAX reference (same math as the PyTorch module, no Pallas) for sanity.
def _reference(paths_emb, label, start_embeds, end_embeds, history_embs,
               relavance, params, *, sim_decay, rel_decay):
    w1, b1, w2, b2 = params
    B = paths_emb.shape[0]
    paths_emb2 = jnp.mean(jnp.squeeze(paths_emb, axis=1), axis=2)
    start = start_embeds.reshape(B, -1, 1, DIM)[:, 0, 0, :]
    end = end_embeds.reshape(B, -1, 1, DIM)[:, 0, 0, :]
    hist = history_embs[:, :, :, 1:, :]
    pairs = [hist[:, :, :, i, :] * hist[:, :, :, i + 1, :]
             for i in range(0, hist.shape[3], 2)]
    pe = jnp.stack(pairs, axis=0).transpose(1, 2, 3, 0, 4)
    path3d = jnp.mean(jnp.mean(pe, axis=1), axis=2)
    relv = relavance.reshape(paths_emb2.shape[0], paths_emb2.shape[1], -1)

    nrm = jnp.linalg.norm(path3d, axis=2, keepdims=True)
    nd = path3d / nrm
    pos = jnp.exp(jnp.sum(nd * nd, axis=2, keepdims=True) / TEMPERATURE)
    ttl = jnp.sum(jnp.exp(jnp.einsum('bnd,bmd->bnm', nd, nd) / TEMPERATURE),
                  axis=2, keepdims=True)
    loss_ind = jnp.sum(-jnp.sum(jnp.log(pos / ttl), axis=1)) / B

    x = jnp.exp(jnp.sum(path3d * start[:, None, :], axis=2, keepdims=True))
    attn = x / jnp.sum(x, axis=1, keepdims=True)
    pooled = jnp.mean(path3d * attn, axis=1)

    feat = jnp.concatenate([start, pooled, end], axis=1)
    h = jnp.maximum(feat @ w1 + b1, 0.0)
    out = h @ w2 + b2
    logit = jax.nn.sigmoid(out)
    p = jnp.concatenate([logit, 1.0 - logit], axis=1)
    logp = jax.nn.log_softmax(p, axis=1)
    loss_logit = -jnp.mean(logp[jnp.arange(B), label])
    rel = jnp.mean(relv, axis=1)
    loss_rel = rel_decay * jnp.mean(-jnp.log(jax.nn.sigmoid(rel)))
    return p, loss_logit + sim_decay * loss_ind + loss_rel


if __name__ == "__main__":
    key = jax.random.PRNGKey(0)
    ks = jax.random.split(key, 9)

    # small shapes consistent with the forward pass
    B, P, L, A1, A2, T, R = 2, 4, 8, 2, 4, 5, 3   # T-1 = 4 -> 2 step-pairs
    paths_emb = 0.3 * jax.random.normal(ks[0], (B, 1, P, L, DIM), jnp.float32)
    label = jnp.array([0, 1], dtype=jnp.int32)
    start_embeds = 0.3 * jax.random.normal(ks[1], (B, DIM), jnp.float32)
    end_embeds = 0.3 * jax.random.normal(ks[2], (B, DIM), jnp.float32)
    history_embs = 0.3 * jax.random.normal(ks[3], (B, A1, A2, T, DIM), jnp.float32)
    relavance = jax.random.normal(ks[4], (B, P, R), jnp.float32)

    # deterministic MLP params (only self.MLP is used by forward)
    lim1 = 1.0 / jnp.sqrt(3.0 * DIM)
    lim2 = 1.0 / jnp.sqrt(float(HIDDEN))
    w1 = jax.random.uniform(ks[5], (3 * DIM, HIDDEN), jnp.float32, -lim1, lim1)
    b1 = jax.random.uniform(ks[6], (1, HIDDEN), jnp.float32, -lim1, lim1)
    w2 = jax.random.uniform(ks[7], (HIDDEN, 1), jnp.float32, -lim2, lim2)
    b2 = jax.random.uniform(ks[8], (1, 1), jnp.float32, -lim2, lim2)
    params = (w1, b1, w2, b2)

    sim_decay, rel_decay = 0.1, 0.01
    p, loss = judge_forward(paths_emb, label, start_embeds, end_embeds,
                            history_embs, relavance, params,
                            sim_decay, rel_decay,
                            use_ind_loss=True, use_rel_loss=True, dim=DIM)
    jax.block_until_ready((p, loss))

    p_ref, loss_ref = _reference(paths_emb, label, start_embeds, end_embeds,
                                 history_embs, relavance, params,
                                 sim_decay=sim_decay, rel_decay=rel_decay)
    assert bool(jnp.isfinite(loss)) and p.shape == (B, 2)
    assert jnp.allclose(p, p_ref, rtol=1e-2, atol=1e-2)
    assert jnp.allclose(loss, loss_ref, rtol=1e-2, atol=1e-2)
    print("KERNEL_OK")
</pallas_src>

<mosaic_0001>
module attributes {stable_mosaic.version = 11 : i64} {
  func.func @_judge_kernel(%arg0: i32, %arg1: memref<8x4x64xf32, #tpu.memory_space<vmem>>, %arg2: memref<8x64xf32, #tpu.memory_space<vmem>>, %arg3: memref<8x64xf32, #tpu.memory_space<vmem>>, %arg4: memref<192x1024xbf16, #tpu.memory_space<vmem>>, %arg5: memref<1x1024xf32, #tpu.memory_space<vmem>>, %arg6: memref<1x1024xf32, #tpu.memory_space<vmem>>, %arg7: memref<1x1xf32, #tpu.memory_space<smem>>, %arg8: memref<8x2xf32, #tpu.memory_space<vmem>>) attributes {dimension_semantics = [#tpu.dimension_semantics<parallel>], iteration_bounds = array<i64: 1>, scalar_prefetch = 0 : i64, scratch_operands = 0 : i64, tpu.core_type = #tpu.core_type<tc>, window_params = [{transform_indices = @transform_0, window_bounds = array<i64: 8, 4, 64>}, {transform_indices = @transform_1, window_bounds = array<i64: 8, 64>}, {transform_indices = @transform_2, window_bounds = array<i64: 8, 64>}, {pipeline_mode = #tpu.pipeline_mode<synchronous>, transform_indices = @transform_3, window_bounds = array<i64: 192, 1024>}, {pipeline_mode = #tpu.pipeline_mode<synchronous>, transform_indices = @transform_4, window_bounds = array<i64: 1, 1024>}, {pipeline_mode = #tpu.pipeline_mode<synchronous>, transform_indices = @transform_5, window_bounds = array<i64: 1, 1024>}, {transform_indices = @transform_6, window_bounds = array<i64: 1, 1>}, {transform_indices = @transform_7, window_bounds = array<i64: 8, 2>}]} {
    %c0 = arith.constant 0 : index
    %c0_0 = arith.constant 0 : index
    %c0_1 = arith.constant 0 : index
    %0 = vector.load %arg1[%c0, %c0_0, %c0_1] : memref<8x4x64xf32, #tpu.memory_space<vmem>>, vector<8x4x64xf32>
    %c0_2 = arith.constant 0 : index
    %c0_3 = arith.constant 0 : index
    %1 = vector.load %arg2[%c0_2, %c0_3] : memref<8x64xf32, #tpu.memory_space<vmem>>, vector<8x64xf32>
    %c0_4 = arith.constant 0 : index
    %c0_5 = arith.constant 0 : index
    %2 = vector.load %arg3[%c0_4, %c0_5] : memref<8x64xf32, #tpu.memory_space<vmem>>, vector<8x64xf32>
    %3 = arith.mulf %0, %0 : vector<8x4x64xf32>
    %cst = arith.constant dense<0.000000e+00> : vector<8x4xf32>
    %4 = vector.multi_reduction <add>, %3, %cst [2] : vector<8x4x64xf32> to vector<8x4xf32>
    %5 = vector.shape_cast %4 : vector<8x4xf32> to vector<8x4x1xf32>
    %6 = math.rsqrt %5 : vector<8x4x1xf32>
    %7 = vector.broadcast %6 : vector<8x4x1xf32> to vector<8x4x64xf32>
    %8 = arith.mulf %0, %7 : vector<8x4x64xf32>
    %9 = arith.truncf %8 : vector<8x4x64xf32> to vector<8x4x64xbf16>
    "tpu.trace_start"() <{level = 10 : i32, message = "bnd,bmd->bnm"}> : () -> ()
    %cst_6 = arith.constant dense<0.000000e+00> : vector<8x4x4xf32>
    %10 = tpu.matmul %9, %9, %cst_6 {dimension_numbers = #tpu.dot_dimension_numbers<[2], [2], [1], [1], [0, 0, 0, 1, 1, 1], [0], [0]>} : vector<8x4x64xbf16>, vector<8x4x64xbf16>, vector<8x4x4xf32> -> vector<8x4x4xf32>
    "tpu.trace_stop"() : () -> ()
    %cst_7 = arith.constant 5.000000e+00 : f32
    %11 = vector.broadcast %cst_7 : f32 to vector<8x4x4xf32>
    %12 = arith.mulf %10, %11 : vector<8x4x4xf32>
    %13 = math.exp %12 : vector<8x4x4xf32>
    %cst_8 = arith.constant dense<0.000000e+00> : vector<8x4xf32>
    %14 = vector.multi_reduction <add>, %13, %cst_8 [2] : vector<8x4x4xf32> to vector<8x4xf32>
    %15 = math.log %14 : vector<8x4xf32>
    %cst_9 = arith.constant dense<0.000000e+00> : vector<8xf32>
    %16 = vector.multi_reduction <add>, %15, %cst_9 [1] : vector<8x4xf32> to vector<8xf32>
    %17 = vector.shape_cast %16 : vector<8xf32> to vector<8x1xf32>
    %cst_10 = arith.constant 2.000000e+01 : f32
    %18 = vector.broadcast %cst_10 : f32 to vector<8x1xf32>
    %19 = arith.subf %17, %18 : vector<8x1xf32>
    %20 = vector.shape_cast %1 : vector<8x64xf32> to vector<8x1x64xf32>
    %21 = vector.broadcast %20 : vector<8x1x64xf32> to vector<8x4x64xf32>
    %22 = arith.mulf %0, %21 : vector<8x4x64xf32>
    %cst_11 = arith.constant dense<0.000000e+00> : vector<8x4xf32>
    %23 = vector.multi_reduction <add>, %22, %cst_11 [2] : vector<8x4x64xf32> to vector<8x4xf32>
    %24 = vector.shape_cast %23 : vector<8x4xf32> to vector<8x4x1xf32>
    %25 = math.exp %24 : vector<8x4x1xf32>
    %cst_12 = arith.constant dense<0.000000e+00> : vector<8x1xf32>
    %26 = vector.multi_reduction <add>, %25, %cst_12 [1] : vector<8x4x1xf32> to vector<8x1xf32>
    %27 = vector.shape_cast %26 : vector<8x1xf32> to vector<8x1x1xf32>
    %28 = vector.broadcast %27 : vector<8x1x1xf32> to vector<8x4x1xf32>
    %29 = arith.divf %25, %28 : vector<8x4x1xf32>
    %30 = vector.broadcast %29 : vector<8x4x1xf32> to vector<8x4x64xf32>
    %31 = arith.mulf %0, %30 : vector<8x4x64xf32>
    %cst_13 = arith.constant dense<0.000000e+00> : vector<8x64xf32>
    %32 = vector.multi_reduction <add>, %31, %cst_13 [1] : vector<8x4x64xf32> to vector<8x64xf32>
    %cst_14 = arith.constant 4.000000e+00 : f32
    %33 = vector.broadcast %cst_14 : f32 to vector<8x64xf32>
    %34 = arith.divf %32, %33 : vector<8x64xf32>
    %35 = arith.truncf %1 : vector<8x64xf32> to vector<8x64xbf16>
    %36 = arith.truncf %34 : vector<8x64xf32> to vector<8x64xbf16>
    %37 = arith.truncf %2 : vector<8x64xf32> to vector<8x64xbf16>
    %cst_15 = arith.constant 0.000000e+00 : f32
    %38 = vector.broadcast %cst_15 : f32 to vector<8x1xf32>
    %c0_16 = arith.constant 0 : index
    %c0_17 = arith.constant 0 : index
    %39 = vector.load %arg4[%c0_16, %c0_17] : memref<192x1024xbf16, #tpu.memory_space<vmem>>, vector<64x256xbf16>
    %cst_18 = arith.constant dense<0.000000e+00> : vector<8x256xf32>
    %40 = tpu.matmul %35, %39, %cst_18 {dimension_numbers = #tpu.dot_dimension_numbers<[1], [0], [0], [1], [0, 0, 1, 1], [], []>} : vector<8x64xbf16>, vector<64x256xbf16>, vector<8x256xf32> -> vector<8x256xf32>
    %c64 = arith.constant 64 : index
    %c0_19 = arith.constant 0 : index
    %41 = vector.load %arg4[%c64, %c0_19] : memref<192x1024xbf16, #tpu.memory_space<vmem>>, vector<64x256xbf16>
    %cst_20 = arith.constant dense<0.000000e+00> : vector<8x256xf32>
    %42 = tpu.matmul %36, %41, %cst_20 {dimension_numbers = #tpu.dot_dimension_numbers<[1], [0], [0], [1], [0, 0, 1, 1], [], []>} : vector<8x64xbf16>, vector<64x256xbf16>, vector<8x256xf32> -> vector<8x256xf32>
    %43 = arith.addf %40, %42 : vector<8x256xf32>
    %c128 = arith.constant 128 : index
    %c0_21 = arith.constant 0 : index
    %44 = vector.load %arg4[%c128, %c0_21] : memref<192x1024xbf16, #tpu.memory_space<vmem>>, vector<64x256xbf16>
    %cst_22 = arith.constant dense<0.000000e+00> : vector<8x256xf32>
    %45 = tpu.matmul %37, %44, %cst_22 {dimension_numbers = #tpu.dot_dimension_numbers<[1], [0], [0], [1], [0, 0, 1, 1], [], []>} : vector<8x64xbf16>, vector<64x256xbf16>, vector<8x256xf32> -> vector<8x256xf32>
    %46 = arith.addf %43, %45 : vector<8x256xf32>
    %c0_23 = arith.constant 0 : index
    %c0_24 = arith.constant 0 : index
    %47 = vector.load %arg5[%c0_23, %c0_24] : memref<1x1024xf32, #tpu.memory_space<vmem>>, vector<1x256xf32>
    %48 = vector.broadcast %47 : vector<1x256xf32> to vector<8x256xf32>
    %49 = arith.addf %46, %48 : vector<8x256xf32>
    %cst_25 = arith.constant 0.000000e+00 : f32
    %50 = vector.broadcast %cst_25 : f32 to vector<8x256xf32>
    %51 = arith.maximumf %49, %50 : vector<8x256xf32>
    %c0_26 = arith.constant 0 : index
    %c0_27 = arith.constant 0 : index
    %52 = vector.load %arg6[%c0_26, %c0_27] : memref<1x1024xf32, #tpu.memory_space<vmem>>, vector<1x256xf32>
    %53 = vector.broadcast %52 : vector<1x256xf32> to vector<8x256xf32>
    %54 = arith.mulf %51, %53 : vector<8x256xf32>
    %cst_28 = arith.constant dense<0.000000e+00> : vector<8xf32>
    %55 = vector.multi_reduction <add>, %54, %cst_28 [1] : vector<8x256xf32> to vector<8xf32>
    %56 = vector.shape_cast %55 : vector<8xf32> to vector<8x1xf32>
    %57 = arith.addf %38, %56 : vector<8x1xf32>
    %c0_29 = arith.constant 0 : index
    %c256 = arith.constant 256 : index
    %58 = vector.load %arg4[%c0_29, %c256] : memref<192x1024xbf16, #tpu.memory_space<vmem>>, vector<64x256xbf16>
    %cst_30 = arith.constant dense<0.000000e+00> : vector<8x256xf32>
    %59 = tpu.matmul %35, %58, %cst_30 {dimension_numbers = #tpu.dot_dimension_numbers<[1], [0], [0], [1], [0, 0, 1, 1], [], []>} : vector<8x64xbf16>, vector<64x256xbf16>, vector<8x256xf32> -> vector<8x256xf32>
    %c64_31 = arith.constant 64 : index
    %c256_32 = arith.constant 256 : index
    %60 = vector.load %arg4[%c64_31, %c256_32] : memref<192x1024xbf16, #tpu.memory_space<vmem>>, vector<64x256xbf16>
    %cst_33 = arith.constant dense<0.000000e+00> : vector<8x256xf32>
    %61 = tpu.matmul %36, %60, %cst_33 {dimension_numbers = #tpu.dot_dimension_numbers<[1], [0], [0], [1], [0, 0, 1, 1], [], []>} : vector<8x64xbf16>, vector<64x256xbf16>, vector<8x256xf32> -> vector<8x256xf32>
    %62 = arith.addf %59, %61 : vector<8x256xf32>
    %c128_34 = arith.constant 128 : index
    %c256_35 = arith.constant 256 : index
    %63 = vector.load %arg4[%c128_34, %c256_35] : memref<192x1024xbf16, #tpu.memory_space<vmem>>, vector<64x256xbf16>
    %cst_36 = arith.constant dense<0.000000e+00> : vector<8x256xf32>
    %64 = tpu.matmul %37, %63, %cst_36 {dimension_numbers = #tpu.dot_dimension_numbers<[1], [0], [0], [1], [0, 0, 1, 1], [], []>} : vector<8x64xbf16>, vector<64x256xbf16>, vector<8x256xf32> -> vector<8x256xf32>
    %65 = arith.addf %62, %64 : vector<8x256xf32>
    %c0_37 = arith.constant 0 : index
    %c256_38 = arith.constant 256 : index
    %66 = vector.load %arg5[%c0_37, %c256_38] : memref<1x1024xf32, #tpu.memory_space<vmem>>, vector<1x256xf32>
    %67 = vector.broadcast %66 : vector<1x256xf32> to vector<8x256xf32>
    %68 = arith.addf %65, %67 : vector<8x256xf32>
    %cst_39 = arith.constant 0.000000e+00 : f32
    %69 = vector.broadcast %cst_39 : f32 to vector<8x256xf32>
    %70 = arith.maximumf %68, %69 : vector<8x256xf32>
    %c0_40 = arith.constant 0 : index
    %c256_41 = arith.constant 256 : index
    %71 = vector.load %arg6[%c0_40, %c256_41] : memref<1x1024xf32, #tpu.memory_space<vmem>>, vector<1x256xf32>
    %72 = vector.broadcast %71 : vector<1x256xf32> to vector<8x256xf32>
    %73 = arith.mulf %70, %72 : vector<8x256xf32>
    %cst_42 = arith.constant dense<0.000000e+00> : vector<8xf32>
    %74 = vector.multi_reduction <add>, %73, %cst_42 [1] : vector<8x256xf32> to vector<8xf32>
    %75 = vector.shape_cast %74 : vector<8xf32> to vector<8x1xf32>
    %76 = arith.addf %57, %75 : vector<8x1xf32>
    %c0_43 = arith.constant 0 : index
    %c512 = arith.constant 512 : index
    %77 = vector.load %arg4[%c0_43, %c512] : memref<192x1024xbf16, #tpu.memory_space<vmem>>, vector<64x256xbf16>
    %cst_44 = arith.constant dense<0.000000e+00> : vector<8x256xf32>
    %78 = tpu.matmul %35, %77, %cst_44 {dimension_numbers = #tpu.dot_dimension_numbers<[1], [0], [0], [1], [0, 0, 1, 1], [], []>} : vector<8x64xbf16>, vector<64x256xbf16>, vector<8x256xf32> -> vector<8x256xf32>
    %c64_45 = arith.constant 64 : index
    %c512_46 = arith.constant 512 : index
    %79 = vector.load %arg4[%c64_45, %c512_46] : memref<192x1024xbf16, #tpu.memory_space<vmem>>, vector<64x256xbf16>
    %cst_47 = arith.constant dense<0.000000e+00> : vector<8x256xf32>
    %80 = tpu.matmul %36, %79, %cst_47 {dimension_numbers = #tpu.dot_dimension_numbers<[1], [0], [0], [1], [0, 0, 1, 1], [], []>} : vector<8x64xbf16>, vector<64x256xbf16>, vector<8x256xf32> -> vector<8x256xf32>
    %81 = arith.addf %78, %80 : vector<8x256xf32>
    %c128_48 = arith.constant 128 : index
    %c512_49 = arith.constant 512 : index
    %82 = vector.load %arg4[%c128_48, %c512_49] : memref<192x1024xbf16, #tpu.memory_space<vmem>>, vector<64x256xbf16>
    %cst_50 = arith.constant dense<0.000000e+00> : vector<8x256xf32>
    %83 = tpu.matmul %37, %82, %cst_50 {dimension_numbers = #tpu.dot_dimension_numbers<[1], [0], [0], [1], [0, 0, 1, 1], [], []>} : vector<8x64xbf16>, vector<64x256xbf16>, vector<8x256xf32> -> vector<8x256xf32>
    %84 = arith.addf %81, %83 : vector<8x256xf32>
    %c0_51 = arith.constant 0 : index
    %c512_52 = arith.constant 512 : index
    %85 = vector.load %arg5[%c0_51, %c512_52] : memref<1x1024xf32, #tpu.memory_space<vmem>>, vector<1x256xf32>
    %86 = vector.broadcast %85 : vector<1x256xf32> to vector<8x256xf32>
    %87 = arith.addf %84, %86 : vector<8x256xf32>
    %cst_53 = arith.constant 0.000000e+00 : f32
    %88 = vector.broadcast %cst_53 : f32 to vector<8x256xf32>
    %89 = arith.maximumf %87, %88 : vector<8x256xf32>
    %c0_54 = arith.constant 0 : index
    %c512_55 = arith.constant 512 : index
    %90 = vector.load %arg6[%c0_54, %c512_55] : memref<1x1024xf32, #tpu.memory_space<vmem>>, vector<1x256xf32>
    %91 = vector.broadcast %90 : vector<1x256xf32> to vector<8x256xf32>
    %92 = arith.mulf %89, %91 : vector<8x256xf32>
    %cst_56 = arith.constant dense<0.000000e+00> : vector<8xf32>
    %93 = vector.multi_reduction <add>, %92, %cst_56 [1] : vector<8x256xf32> to vector<8xf32>
    %94 = vector.shape_cast %93 : vector<8xf32> to vector<8x1xf32>
    %95 = arith.addf %76, %94 : vector<8x1xf32>
    %c0_57 = arith.constant 0 : index
    %c768 = arith.constant 768 : index
    %96 = vector.load %arg4[%c0_57, %c768] : memref<192x1024xbf16, #tpu.memory_space<vmem>>, vector<64x256xbf16>
    %cst_58 = arith.constant dense<0.000000e+00> : vector<8x256xf32>
    %97 = tpu.matmul %35, %96, %cst_58 {dimension_numbers = #tpu.dot_dimension_numbers<[1], [0], [0], [1], [0, 0, 1, 1], [], []>} : vector<8x64xbf16>, vector<64x256xbf16>, vector<8x256xf32> -> vector<8x256xf32>
    %c64_59 = arith.constant 64 : index
    %c768_60 = arith.constant 768 : index
    %98 = vector.load %arg4[%c64_59, %c768_60] : memref<192x1024xbf16, #tpu.memory_space<vmem>>, vector<64x256xbf16>
    %cst_61 = arith.constant dense<0.000000e+00> : vector<8x256xf32>
    %99 = tpu.matmul %36, %98, %cst_61 {dimension_numbers = #tpu.dot_dimension_numbers<[1], [0], [0], [1], [0, 0, 1, 1], [], []>} : vector<8x64xbf16>, vector<64x256xbf16>, vector<8x256xf32> -> vector<8x256xf32>
    %100 = arith.addf %97, %99 : vector<8x256xf32>
    %c128_62 = arith.constant 128 : index
    %c768_63 = arith.constant 768 : index
    %101 = vector.load %arg4[%c128_62, %c768_63] : memref<192x1024xbf16, #tpu.memory_space<vmem>>, vector<64x256xbf16>
    %cst_64 = arith.constant dense<0.000000e+00> : vector<8x256xf32>
    %102 = tpu.matmul %37, %101, %cst_64 {dimension_numbers = #tpu.dot_dimension_numbers<[1], [0], [0], [1], [0, 0, 1, 1], [], []>} : vector<8x64xbf16>, vector<64x256xbf16>, vector<8x256xf32> -> vector<8x256xf32>
    %103 = arith.addf %100, %102 : vector<8x256xf32>
    %c0_65 = arith.constant 0 : index
    %c768_66 = arith.constant 768 : index
    %104 = vector.load %arg5[%c0_65, %c768_66] : memref<1x1024xf32, #tpu.memory_space<vmem>>, vector<1x256xf32>
    %105 = vector.broadcast %104 : vector<1x256xf32> to vector<8x256xf32>
    %106 = arith.addf %103, %105 : vector<8x256xf32>
    %cst_67 = arith.constant 0.000000e+00 : f32
    %107 = vector.broadcast %cst_67 : f32 to vector<8x256xf32>
    %108 = arith.maximumf %106, %107 : vector<8x256xf32>
    %c0_68 = arith.constant 0 : index
    %c768_69 = arith.constant 768 : index
    %109 = vector.load %arg6[%c0_68, %c768_69] : memref<1x1024xf32, #tpu.memory_space<vmem>>, vector<1x256xf32>
    %110 = vector.broadcast %109 : vector<1x256xf32> to vector<8x256xf32>
    %111 = arith.mulf %108, %110 : vector<8x256xf32>
    %cst_70 = arith.constant dense<0.000000e+00> : vector<8xf32>
    %112 = vector.multi_reduction <add>, %111, %cst_70 [1] : vector<8x256xf32> to vector<8xf32>
    %113 = vector.shape_cast %112 : vector<8xf32> to vector<8x1xf32>
    %114 = arith.addf %95, %113 : vector<8x1xf32>
    %c0_71 = arith.constant 0 : index
    %c0_72 = arith.constant 0 : index
    %115 = memref.load %arg7[%c0_71, %c0_72] : memref<1x1xf32, #tpu.memory_space<smem>>
    %116 = vector.broadcast %115 : f32 to vector<8x1xf32>
    %117 = arith.addf %114, %116 : vector<8x1xf32>
    %118 = arith.negf %117 : vector<8x1xf32>
    %119 = math.exp %118 : vector<8x1xf32>
    %cst_73 = arith.constant 1.000000e+00 : f32
    %120 = vector.broadcast %cst_73 : f32 to vector<8x1xf32>
    %121 = arith.addf %120, %119 : vector<8x1xf32>
    %122 = arith.divf %120, %121 : vector<8x1xf32>
    %123 = tpu.concatenate %122, %19 in 1 : vector<8x1xf32>, vector<8x1xf32> -> vector<8x2xf32>
    %c0_74 = arith.constant 0 : index
    %c0_75 = arith.constant 0 : index
    %124 = vector.load %arg8[%c0_74, %c0_75] : memref<8x2xf32, #tpu.memory_space<vmem>>, vector<8x2xf32>
    tpu.vector_store %arg8[%c0_74, %c0_75], %123 {strides = array<i32>} : memref<8x2xf32, #tpu.memory_space<vmem>>, vector<8x2xf32>,
    return
  }
  func.func @transform_0(%arg0: i32) -> (i32, i32, i32) {
    %c0_i32 = arith.constant 0 : i32
    %c0_i32_0 = arith.constant 0 : i32
    %c0_i32_1 = arith.constant 0 : i32
    return %arg0, %c0_i32, %c0_i32_0 : i32, i32, i32
  }
  func.func @transform_1(%arg0: i32) -> (i32, i32) {
    %c0_i32 = arith.constant 0 : i32
    %c0_i32_0 = arith.constant 0 : i32
    return %arg0, %c0_i32 : i32, i32
  }
  func.func @transform_2(%arg0: i32) -> (i32, i32) {
    %c0_i32 = arith.constant 0 : i32
    %c0_i32_0 = arith.constant 0 : i32
    return %arg0, %c0_i32 : i32, i32
  }
  func.func @transform_3(%arg0: i32) -> (i32, i32) {
    %c0_i32 = arith.constant 0 : i32
    %c0_i32_0 = arith.constant 0 : i32
    %c0_i32_1 = arith.constant 0 : i32
    return %c0_i32, %c0_i32_0 : i32, i32
  }
  func.func @transform_4(%arg0: i32) -> (i32, i32) {
    %c0_i32 = arith.constant 0 : i32
    %c0_i32_0 = arith.constant 0 : i32
    %c0_i32_1 = arith.constant 0 : i32
    return %c0_i32, %c0_i32_0 : i32, i32
  }
  func.func @transform_5(%arg0: i32) -> (i32, i32) {
    %c0_i32 = arith.constant 0 : i32
    %c0_i32_0 = arith.constant 0 : i32
    %c0_i32_1 = arith.constant 0 : i32
    return %c0_i32, %c0_i32_0 : i32, i32
  }
  func.func @transform_6(%arg0: i32) -> (i32, i32) {
    %c0_i32 = arith.constant 0 : i32
    %c0_i32_0 = arith.constant 0 : i32
    %c0_i32_1 = arith.constant 0 : i32
    return %c0_i32, %c0_i32_0 : i32, i32
  }
  func.func @transform_7(%arg0: i32) -> (i32, i32) {
    %c0_i32 = arith.constant 0 : i32
    %c0_i32_0 = arith.constant 0 : i32
    return %arg0, %c0_i32 : i32, i32
  }
}

</mosaic_0001>

<bundles_post_ra>
// kernel: judge_forward.1
= control target key start
LH: loop header
LB: loop body
LE: loop exit
PB: predicated region body
PF: predicated region fallthrough
CT: control target
= control target key end

     0   :  { %v513_v0 = vlaneseq  ;;  %v2394_v1 = vmov 1966171168   ;;  %vm46_vm0 = vcmask 519168   ;;  %vm2396_vm1 = vmmov 0   ;;  %s3144_s1 = inlined_call_operand.vmem [shape: f32[8,64], index: 1, kind: input, shape index: {}]   ;;  %s3145_s0 = inlined_call_operand.vmem [shape: f32[8,4,64], index: 0, kind: input, shape index: {}]   ;;  %s3146_s3 = inlined_call_operand.vmem [shape: bf16[192,1024], index: 3, kind: input, shape index: {}]   ;;  %s3147_s2 = inlined_call_operand.vmem [shape: f32[8,64], index: 2, kind: input, shape index: {}]   ;;  %s3148_s4 = inlined_call_operand.vmem [shape: f32[1,1024], index: 4, kind: input, shape index: {}]   ;;  %s3149_s5 = inlined_call_operand.vmem [shape: f32[1,1024], index: 5, kind: input, shape index: {}]   ;;  %s3150_s6 = inlined_call_operand.<no memory space> [shape: f32[1,1], index: 6, kind: input, shape index: {}]   ;;  %s3151_s7 = inlined_call_operand.vmem [shape: f32[8,2], index: 7, kind: output, shape index: {}]  }
   0x1   :  { %v570_v2 = vunpack.c.l.s4 %v2394_v1  ;;  %v2441_v3 = vld [vmem:[%s3144_s1] sm:$0xff]  ;;  %v2461_v16 = vld [vmem:[%s3145_s0 + $0x10] sm:$0xf]  ;;  %v2468_v21 = vld [vmem:[%s3145_s0 + $0x8] sm:$0xf]  ;;  %vm705_vm2 = vcmask 1043456  }
   0x2   :  { %v2444_v4 = vshrl.u32 %v513_v0, 7  ;;  %v568_v6 = vcombine.high %v2441_v3, %v2441_v3  ;;  %v2456_v15 = vld [vmem:[%s3145_s0] sm:$0xf]  ;;  %v2473_v22 = vld [vmem:[%s3145_s0 + $0x14] sm:$0xf]  ;;  %v40_v56 = vmul.f32 %v2468_v21, %v2468_v21  ;;  %v42_v60 = vmul.f32 %v2461_v16, %v2461_v16 }
   0x3   :  { %v571_v5 = vunpack.c.0.s8 %v570_v2  ;;  %v2482_v28 = vld [vmem:[%s3145_s0 + $0x4] sm:$0xf]  ;;  %v2491_v35 = vld [vmem:[%s3145_s0 + $0xc] sm:$0xf]  ;;  %v2503_v44 = vld [vmem:[%s3145_s0 + $0x18] sm:$0xf]  ;;  %v38_v46 = vmul.f32 %v2456_v15, %v2456_v15  ;;  %v43_v62 = vmul.f32 %v2473_v22, %v2473_v22 }
   0x4   :  { %v2451_v9 = vsub.s32 0, %v2444_v4  ;;  %v2512_v48 = vld [vmem:[%s3145_s0 + $0x1c] sm:$0xf]  ;;  %v39_v54 = vmul.f32 %v2482_v28, %v2482_v28  ;;  %v41_v58 = vmul.f32 %v2491_v35, %v2491_v35  ;;  %v53_v59 = vsel %vm46_vm0, %v40_v56, 0.0 }
   0x5   :  { %v574_v7 = vsub.s32 %v571_v5, %v2444_v4  ;;  %v47_v51 = vsel %vm46_vm0, %v38_v46, 0.0  ;;  %v59_v63 = vsel %vm46_vm0, %v42_v60, 0.0  ;;  %v44_v1 = vmul.f32 %v2503_v44, %v2503_v44 }
   0x6   :  { %v50_v57 = vsel %vm46_vm0, %v39_v54, 0.0  ;;  %v56_v61 = vsel %vm46_vm0, %v41_v58, 0.0  ;;  %v62_v2 = vsel %vm46_vm0, %v43_v62, 0.0  ;;  %v45_v5 = vmul.f32 %v2512_v48, %v2512_v48 }
   0x7   :  { %v575_v8 = vrot.slane %v2441_v3, %v574_v7  ;;  %v582_v10 = vrot.slane %v568_v6, %v574_v7  ;;  %v65_v6 = vsel %vm46_vm0, %v44_v1, 0.0  ;;  %vm95_vm3 = vcmask 523264  }
   0x8   :  { %vm547_vm4 = vcmask 1041409   ;;  %vm549_vm5 = vcmask 1042434   ;;  %vm551_vm6 = vcmask 1043459   ;;  %vm553_vm7 = vcmask 1044484  }
   0x9   :  { %v591_v11 = vrot.slane %v575_v8, %v574_v7  ;;  %v598_v12 = vrot.slane %v582_v10, %v574_v7  ;;  %v584_v13 = vcombine.high %v582_v10, %v582_v10  ;;  %v583_v14 = vcombine.high %v575_v8, %v575_v8 }
   0xa   :  { %v2395_v8 = vmov 0.0   ;;  %vm555_vm8 = vcmask 1045509   ;;  %vm557_vm9 = vcmask 1046534   ;;  %vm559_vm10 = vcmask 1047559  }
   0xb   :  { %v620_v17 = vrot.slane %v591_v11, %v2451_v9  ;;  %v613_v18 = vcombine.high %v591_v11, %v591_v11  ;;  %v636_v19 = vrot.slane %v598_v12, %v2451_v9  ;;  %v612_v20 = vrot.slane %v584_v13, %v574_v7  ;;  %2257 = vmatprep.subr.bf16.mxu0 %v2395_v8 }
   0xc   :  { %v605_v23 = vrot.slane %v583_v14, %v574_v7  ;;  %v614_v34 = vcombine.high %v598_v12, %v598_v12  ;;  %v68_v7 = vsel %vm46_vm0, %v45_v5, 0.0  ;;  %2263 = vmatprep.subr.bf16.mxu1 %v2395_v8  ;;  %2259 = vmatprep.mubr.msk.bf16.mxu0 %vm2396_vm1, %v2395_v8  ;;  %vm464_vm11 = vcmask 27648  }
   0xd   :  { %v657_v24 = vmul.f32 %v620_v17, %v2456_v15  ;;  %v628_v25 = vrot.slane %v613_v18, %v2451_v9  ;;  %v661_v26 = vmul.f32 %v636_v19, %v2461_v16  ;;  %v640_v27 = vrot.slane %v612_v20, %v2451_v9  ;;  %2265 = vmatprep.mubr.msk.bf16.mxu1 %vm2396_vm1, %v2395_v8 }
   0xe   :  { %v624_v29 = vrot.slane %v605_v23, %v2451_v9  ;;  %v615_v30 = vcombine.high %v605_v23, %v605_v23  ;;  %v616_v40 = vcombine.high %v612_v20, %v612_v20  ;;  %v644_v43 = vrot.slane %v614_v34, %v2451_v9 }
   0xf   :  { %v665_v31 = vsel %vm46_vm0, %v657_v24, 0.0  ;;  %v659_v32 = vmul.f32 %v628_v25, %v2468_v21  ;;  %v662_v33 = vmul.f32 %v640_v27, %v2473_v22  ;;  %v677_v38 = vsel %vm46_vm0, %v661_v26, 0.0 }
  0x10   :  { %666 = vadd.xlane.f32.xlu0 %v665_v31  ;;  %v632_v36 = vrot.slane %v615_v30, %v2451_v9  ;;  %v658_v39 = vmul.f32 %v624_v29, %v2482_v28  ;;  %v648_v47 = vrot.slane %v616_v40, %v2451_v9  ;;  %v663_v50 = vmul.f32 %v644_v43, %v2503_v44 }
  0x11   :  { %v671_v37 = vsel %vm46_vm0, %v659_v32, 0.0  ;;  %v680_v41 = vsel %vm46_vm0, %v662_v33, 0.0  ;;  %vm562_vm12 = vcmask 31744   ;;  %vm2115_vm13 = vcmask 7168  }
  0x12   :  { %672 = vadd.xlane.f32.xlu1 %v671_v37  ;;  %v660_v42 = vmul.f32 %v632_v36, %v2491_v35  ;;  %v668_v45 = vsel %vm46_vm0, %v658_v39, 0.0  ;;  %v664_v52 = vmul.f32 %v648_v47, %v2512_v48  ;;  %v683_v53 = vsel %vm46_vm0, %v663_v50, 0.0 }
  0x13   :  { %vm2117_vm14 = vcmask 15360  }
  0x14   :  { %678 = vadd.xlane.f32.xlu0 %v677_v38  ;;  %v674_v49 = vsel %vm46_vm0, %v660_v42, 0.0  ;;  %v686_v55 = vsel %vm46_vm0, %v664_v52, 0.0 }
  0x16   :  { %681 = vadd.xlane.f32.xlu1 %v680_v41 }
  0x18   :  { %669 = vadd.xlane.f32.xlu0 %v668_v45 }
  0x1a   :  { %675 = vadd.xlane.f32.xlu1 %v674_v49 }
  0x1c   :  { %48 = vadd.xlane.f32.xlu0 %v47_v51 }
  0x1e   :  { %684 = vadd.xlane.f32.xlu1 %v683_v53 }
  0x20   :  { %687 = vadd.xlane.f32.xlu0 %v686_v55 }
  0x22   :  { %51 = vadd.xlane.f32.xlu1 %v50_v57 }
  0x24   :  { %54 = vadd.xlane.f32.xlu0 %v53_v59 }
  0x26   :  { %57 = vadd.xlane.f32.xlu1 %v56_v61 }
  0x28   :  { %60 = vadd.xlane.f32.xlu0 %v59_v63 }
  0x2a   :  { %63 = vadd.xlane.f32.xlu1 %v62_v2 }
  0x2c   :  { %66 = vadd.xlane.f32.xlu0 %v65_v6 }
  0x2e   :  { %69 = vadd.xlane.f32.xlu1 %v68_v7 }
  0x9d   :  { %v667_v10 = vpop.xlane.xlu0 %666 }
  0x9e   :  { %v689_v11 = vmul.f32 1.442695, %v667_v10 }
  0x9f   :  { %v673_v12 = vpop.xlane.xlu1 %672 }
  0xa0   :  { %2310 = vpow2.f32 %v689_v11  ;;  %v693_v13 = vmul.f32 1.442695, %v673_v12 }
  0xa1   :  { %v679_v14 = vpop.xlane.xlu0 %678 }
  0xa2   :  { %2312 = vpow2.f32 %v693_v13  ;;  %v697_v17 = vmul.f32 1.442695, %v679_v14 }
  0xa3   :  { %v682_v18 = vpop.xlane.xlu1 %681 }
  0xa4   :  { %2314 = vpow2.f32 %v697_v17  ;;  %v699_v19 = vmul.f32 1.442695, %v682_v18 }
  0xa5   :  { %v670_v20 = vpop.xlane.xlu0 %669 }
  0xa6   :  { %2316 = vpow2.f32 %v699_v19  ;;  %v691_v23 = vmul.f32 1.442695, %v670_v20 }
  0xa7   :  { %v676_v24 = vpop.xlane.xlu1 %675 }
  0xa8   :  { %2318 = vpow2.f32 %v691_v23  ;;  %v695_v25 = vmul.f32 1.442695, %v676_v24 }
  0xa9   :  { %v49_v26 = vpop.xlane.xlu0 %48 }
  0xaa   :  { %v2547_v27 = vpop.eup %2310  ;;  %2320 = vpow2.f32 %v695_v25 }
  0xab   :  { %v706_v29 = vsel %vm705_vm2, %v2547_v27, 0.0  ;;  %2322 = vrsqrt.f32 %v49_v26  ;;  %v685_v30 = vpop.xlane.xlu1 %684 }
  0xac   :  { %v2551_v31 = vpop.eup %2312  ;;  %v707_v32 = vrot.slane %v706_v29, 4  ;;  %v701_v33 = vmul.f32 1.442695, %v685_v30 }
  0xad   :  { %v720_v34 = vsel %vm705_vm2, %v2551_v31, 0.0  ;;  %v688_v36 = vpop.xlane.xlu0 %687 }
  0xae   :  { %v2555_v37 = vpop.eup %2314  ;;  %v708_v38 = vadd.f32 %v707_v32, %v706_v29  ;;  %v721_v39 = vrot.slane %v720_v34, 4  ;;  %2324 = vpow2.f32 %v701_v33  ;;  %v703_v40 = vmul.f32 1.442695, %v688_v36 }
  0xaf   :  { %v734_v41 = vsel %vm705_vm2, %v2555_v37, 0.0  ;;  %v52_v42 = vpop.xlane.xlu1 %51 }
  0xb0   :  { %v2559_v43 = vpop.eup %2316  ;;  %v709_v45 = vrot.slane %v708_v38, 2  ;;  %v722_v46 = vadd.f32 %v721_v39, %v720_v34  ;;  %v735_v47 = vrot.slane %v734_v41, 4  ;;  %2326 = vpow2.f32 %v703_v40 }
  0xb1   :  { %v741_v49 = vsel %vm705_vm2, %v2559_v43, 0.0  ;;  %2328 = vrsqrt.f32 %v52_v42  ;;  %v55_v50 = vpop.xlane.xlu0 %54 }
  0xb2   :  { %v2563_v51 = vpop.eup %2318  ;;  %v710_v52 = vadd.f32 %v709_v45, %v708_v38  ;;  %v723_v53 = vrot.slane %v722_v46, 2  ;;  %v736_v54 = vadd.f32 %v735_v47, %v734_v41  ;;  %v742_v55 = vrot.slane %v741_v49, 4 }
  0xb3   :  { %v713_v56 = vsel %vm705_vm2, %v2563_v51, 0.0  ;;  %2330 = vrsqrt.f32 %v55_v50  ;;  %v58_v57 = vpop.xlane.xlu1 %57 }
  0xb4   :  { %v2567_v58 = vpop.eup %2320  ;;  %v711_v59 = vrot.slane %v710_v52, 1  ;;  %v724_v60 = vadd.f32 %v723_v53, %v722_v46  ;;  %v737_v61 = vrot.slane %v736_v54, 2  ;;  %v743_v62 = vadd.f32 %v742_v55, %v741_v49 }
  0xb5   :  { %v2323_v63 = vpop.eup %2322  ;;  %v714_v1 = vrot.slane %v713_v56, 4  ;;  %v727_v2 = vsel %vm705_vm2, %v2567_v58, 0.0  ;;  %2332 = vrsqrt.f32 %v58_v57  ;;  %v61_v5 = vpop.xlane.xlu0 %60 }
  0xb6   :  { %v712_v6 = vadd.f32 %v711_v59, %v710_v52  ;;  %v725_v7 = vrot.slane %v724_v60, 1  ;;  %v738_v10 = vadd.f32 %v737_v61, %v736_v54  ;;  %v744_v11 = vrot.slane %v743_v62, 2 }
  0xb7   :  { %v715_v12 = vadd.f32 %v714_v1, %v713_v56  ;;  %v728_v13 = vrot.slane %v727_v2, 4  ;;  %2334 = vrsqrt.f32 %v61_v5  ;;  %v79_v14 = vmul.f32 %v2323_v63, %v2456_v15  ;;  %v64_v29 = vpop.xlane.xlu1 %63 }
  0xb8   :  { %v2572_v17 = vpop.eup %2324  ;;  %2336 = vrcp.f32 %v712_v6  ;;  %v726_v18 = vadd.f32 %v725_v7, %v724_v60  ;;  %v739_v19 = vrot.slane %v738_v10, 1  ;;  %v745_v20 = vadd.f32 %v744_v11, %v743_v62 }
  0xb9   :  { %v716_v23 = vrot.slane %v715_v12, 2  ;;  %v729_v24 = vadd.f32 %v728_v13, %v727_v2  ;;  %v748_v25 = vsel %vm705_vm2, %v2572_v17, 0.0  ;;  %v87_v26 = vpack.c.bf16 %v79_v14, %v79_v14  ;;  %v67_v47 = vpop.xlane.xlu0 %66 }
  0xba   :  { %v2576_v30 = vpop.eup %2326  ;;  %2338 = vrcp.f32 %v726_v18  ;;  %v740_v32 = vadd.f32 %v739_v19, %v738_v10  ;;  %v746_v33 = vrot.slane %v745_v20, 1  ;;  %v749_v34 = vrot.slane %v748_v25, 4 }
  0xbb   :  { %v2329_v36 = vpop.eup %2328  ;;  %v717_v38 = vadd.f32 %v716_v23, %v715_v12  ;;  %v730_v39 = vrot.slane %v729_v24, 2  ;;  %v755_v40 = vsel %vm705_vm2, %v2576_v30, 0.0  ;;  %v97_v41 = vsel %vm95_vm3, %v87_v26, 0  ;;  %v70_v54 = vpop.xlane.xlu1 %69 }
  0xbc   :  { %2340 = vrcp.f32 %v740_v32  ;;  %v747_v42 = vadd.f32 %v746_v33, %v745_v20  ;;  %v750_v45 = vadd.f32 %v749_v34, %v748_v25  ;;  %v756_v46 = vrot.slane %v755_v40, 4  ;;  %2258 = vmatpush3.bf16.xpose.msra.mxu0 %v97_v41 }
  0xbd   :  { %v2331_v49 = vpop.eup %2330  ;;  %v718_v50 = vrot.slane %v717_v38, 1  ;;  %v731_v52 = vadd.f32 %v730_v39, %v729_v24  ;;  %2342 = vrsqrt.f32 %v64_v29  ;;  %v80_v53 = vmul.f32 %v2329_v36, %v2482_v28  ;;  %2269 = vmatprep.subr.bf16.mxu0 %v2395_v8 }
  0xbe   :  { %2344 = vrcp.f32 %v747_v42  ;;  %v751_v55 = vrot.slane %v750_v45, 2  ;;  %v757_v56 = vadd.f32 %v756_v46, %v755_v40  ;;  %v81_v57 = vmul.f32 %v2331_v49, %v2468_v21 }
  0xbf   :  { %v2333_v59 = vpop.eup %2332  ;;  %v719_v60 = vadd.f32 %v718_v50, %v717_v38  ;;  %v732_v61 = vrot.slane %v731_v52, 1  ;;  %v88_v62 = vpack.c.bf16 %v80_v53, %v80_v53  ;;  %2346 = vrsqrt.f32 %v67_v47 }
  0xc0   :  { %v752_v63 = vadd.f32 %v751_v55, %v750_v45  ;;  %v758_v1 = vrot.slane %v757_v56, 2  ;;  %v89_v2 = vpack.c.bf16 %v81_v57, %v81_v57  ;;  %2348 = vrsqrt.f32 %v70_v54 }
  0xc1   :  { %v2335_v5 = vpop.eup %2334  ;;  %2350 = vrcp.f32 %v719_v60  ;;  %v733_v6 = vadd.f32 %v732_v61, %v731_v52  ;;  %v140_v7 = vsel %vm95_vm3, %v88_v62, 0  ;;  %v82_v10 = vmul.f32 %v2333_v59, %v2491_v35 }
  0xc2   :  { %v2337_v11 = vpop.eup %2336  ;;  %v753_v12 = vrot.slane %v752_v63, 1  ;;  %v759_v13 = vadd.f32 %v758_v1, %v757_v56  ;;  %2264 = vmatpush3.bf16.xpose.msra.mxu1 %v140_v7  ;;  %v183_v14 = vsel %vm95_vm3, %v89_v2, 0  ;;  %v83_v18 = vmul.f32 %v2335_v5, %v2461_v16  ;;  %v2649_v5 = vld [vmem:[%s3146_s3 + $0x20] sm:$0xff] }
  0xc3   :  { %v763_v19 = vmul.f32 %v2337_v11, %v2547_v27  ;;  %2352 = vrcp.f32 %v733_v6  ;;  %2260 = vmatmul.mubr.msk.bf16.vlgmr.msra.gmra.mrb[0].mxu0 %vm95_vm3, %v87_v26  ;;  %2275 = vmatprep.subr.bf16.mxu1 %v2395_v8  ;;  %v2591_v20 = vpack.c.bf16 %v82_v10, %v82_v10 }
  0xc4   :  { %v2339_v23 = vpop.eup %2338  ;;  %v754_v24 = vadd.f32 %v753_v12, %v752_v63  ;;  %v760_v25 = vrot.slane %v759_v13, 1  ;;  %2270 = vmatpush3.bf16.xpose.msra.mxu0 %v183_v14  ;;  %2271 = vmatprep.mubr.msk.bf16.mxu0 %vm2396_vm1, %v2395_v8  ;;  %v2598_v27 = vpack.c.bf16 %v83_v18, %v83_v18 }
  0xc5   :  { %v778_v29 = vmul.f32 %v763_v19, %v2456_v15  ;;  %v767_v32 = vmul.f32 %v2339_v23, %v2551_v31  ;;  %2281 = vmatprep.subr.bf16.mxu0 %v2395_v8  ;;  %v226_v40 = vsel %vm95_vm3, %v2591_v20, 0 }
  0xc6   :  { %v2341_v26 = vpop.eup %2340  ;;  %2354 = vrcp.f32 %v754_v24  ;;  %v761_v33 = vadd.f32 %v760_v25, %v759_v13 }
  0xc7   :  { %v2343_v34 = vpop.eup %2342  ;;  %v786_v36 = vsel %vm46_vm0, %v778_v29, 0.0  ;;  %v780_v38 = vmul.f32 %v767_v32, %v2468_v21  ;;  %v771_v39 = vmul.f32 %v2341_v26, %v2555_v37  ;;  %v269_v21 = vsel %vm95_vm3, %v2598_v27, 0 }
  0xc8   :  { %v2345_v15 = vpop.eup %2344  ;;  %v787_v41 = vrot.slane %v786_v36, 4  ;;  %2356 = vrcp.f32 %v761_v33  ;;  %v84_v31 = vmul.f32 %v2343_v34, %v2473_v22  ;;  %v2669_v33 = vld [vmem:[%s3146_s3 + $0x140] sm:$0xff] }
  0xc9   :  { %v2347_v42 = vpop.eup %2346  ;;  %v800_v45 = vsel %vm46_vm0, %v780_v38, 0.0  ;;  %v782_v46 = vmul.f32 %v771_v39, %v2461_v16  ;;  %v773_v47 = vmul.f32 %v2345_v15, %v2559_v43  ;;  %2266 = vmatmul.mubr.msk.bf16.vlgmr.msra.gmra.mrb[0].mxu1 %vm95_vm3, %v88_v62  ;;  %v2618_v16 = vld [vmem:[%s3146_s3 + $0x100] sm:$0xff] }
  0xca   :  { %v2349_v37 = vpop.eup %2348  ;;  %v788_v49 = vadd.f32 %v787_v41, %v786_v36  ;;  %v801_v50 = vrot.slane %v800_v45, 4  ;;  %2276 = vmatpush3.bf16.xpose.msra.mxu1 %v226_v40  ;;  %2277 = vmatprep.mubr.msk.bf16.mxu1 %vm2396_vm1, %v2395_v8  ;;  %v85_v52 = vmul.f32 %v2347_v42, %v2503_v44  ;;  %v2623_v43 = vld [vmem:[%s3146_s3 + $0x120] sm:$0xff]  ;;  %v2629_v56 = vpack.c.bf16 %v84_v31, %v84_v31 }
  0xcb   :  { %v2351_v53 = vpop.eup %2350  ;;  %v814_v54 = vsel %vm46_vm0, %v782_v46, 0.0  ;;  %v783_v55 = vmul.f32 %v773_v47, %v2473_v22  ;;  %2272 = vmatmul.mubr.msk.bf16.vlgmr.msra.gmra.mrb[4].mxu0 %vm95_vm3, %v89_v2  ;;  %2287 = vmatprep.subr.bf16.mxu1 %v2395_v8  ;;  %v86_v1 = vmul.f32 %v2349_v37, %v2512_v48  ;;  %v2133_v2 = vcombine.high %v2618_v16, %v2623_v43  ;;  %v2674_v34 = vld [vmem:[%s3146_s3 + $0x160] sm:$0xff] }
  0xcc   :  { %v789_v57 = vrot.slane %v788_v49, 2  ;;  %v802_v59 = vadd.f32 %v801_v50, %v800_v45  ;;  %v815_v60 = vrot.slane %v814_v54, 4  ;;  %v765_v61 = vmul.f32 %v2351_v53, %v2563_v51  ;;  %2282 = vmatpush3.bf16.xpose.msra.mxu0 %v269_v21  ;;  %2283 = vmatprep.mubr.msk.bf16.mxu0 %vm2396_vm1, %v2395_v8  ;;  %v2644_v51 = vld [vmem:[%s3146_s3] sm:$0xff] }
  0xcd   :  { %v2353_v62 = vpop.eup %2352  ;;  %v821_v63 = vsel %vm46_vm0, %v783_v55, 0.0  ;;  %2293 = vmatprep.subr.bf16.mxu0 %v2395_v8  ;;  %v2636_v22 = vpack.c.bf16 %v85_v52, %v85_v52  ;;  %v312_v14 = vsel %vm95_vm3, %v2629_v56, 0  ;;  %v2132_v18 = vcombine.low %v2618_v16, %v2623_v43  ;;  %v2697_v21 = vld [vmem:[%s3146_s3 + $0x40] sm:$0xff] }
  0xce   :  { %v790_v6 = vadd.f32 %v789_v57, %v788_v49  ;;  %v803_v7 = vrot.slane %v802_v59, 2  ;;  %v816_v10 = vadd.f32 %v815_v60, %v814_v54  ;;  %v822_v11 = vrot.slane %v821_v63, 4  ;;  %v2702_v37 = vld [vmem:[%s3146_s3 + $0x60] sm:$0xff] }
  0xcf   :  { %v779_v12 = vmul.f32 %v765_v61, %v2482_v28  ;;  %v769_v13 = vmul.f32 %v2353_v62, %v2567_v58  ;;  %v2142_v29 = vcombine.high %v2644_v51, %v2649_v5  ;;  %v355_v58 = vsel %vm95_vm3, %v2636_v22, 0  ;;  %v2748_v43 = vld [vmem:[%s3146_s3 + $0xa0] sm:$0xff] }
  0xd0   :  { %v2355_v19 = vpop.eup %2354  ;;  %v804_v23 = vadd.f32 %v803_v7, %v802_v59  ;;  %v817_v24 = vrot.slane %v816_v10, 2  ;;  %v823_v25 = vadd.f32 %v822_v11, %v821_v63  ;;  %v2141_v45 = vcombine.low %v2644_v51, %v2649_v5  ;;  %v2721_v7 = vld [vmem:[%s3146_s3 + $0x1a0] sm:$0xff] }
  0xd1   :  { %v793_v32 = vsel %vm46_vm0, %v779_v12, 0.0  ;;  %v781_v26 = vmul.f32 %v769_v13, %v2491_v35  ;;  %v775_v28 = vmul.f32 %v2355_v19, %v2572_v17  ;;  %2278 = vmatmul.mubr.msk.bf16.vlgmr.msra.gmra.mrb[4].mxu1 %vm95_vm3, %v2591_v20  ;;  %v791_v35 = vrot.slane %v790_v6, 1 }
  0xd2   :  { %v2357_v36 = vpop.eup %2356  ;;  %v818_v38 = vadd.f32 %v817_v24, %v816_v10  ;;  %v824_v17 = vrot.slane %v823_v25, 2  ;;  %2288 = vmatpush3.bf16.xpose.msra.mxu1 %v312_v14  ;;  %2289 = vmatprep.mubr.msk.bf16.mxu1 %vm2396_vm1, %v2395_v8  ;;  %v2678_v20 = vpack.c.bf16 %v86_v1, %v86_v1  ;;  %v794_v39 = vrot.slane %v793_v32, 4 }
  0xd3   :  { %v807_v40 = vsel %vm46_vm0, %v781_v26, 0.0  ;;  %v784_v15 = vmul.f32 %v775_v28, %v2503_v44  ;;  %v777_v41 = vmul.f32 %v2357_v36, %v2576_v30  ;;  %2284 = vmatmul.mubr.msk.bf16.vlgmr.msra.gmra.mrb[8].mxu0 %vm95_vm3, %v2598_v27  ;;  %2299 = vmatprep.subr.bf16.mxu1 %v2395_v8  ;;  %v805_v31 = vrot.slane %v804_v23, 1 }
  0xd4   :  { %v825_v42 = vadd.f32 %v824_v17, %v823_v25  ;;  %2294 = vmatpush3.bf16.xpose.msra.mxu0 %v355_v58  ;;  %2295 = vmatprep.mubr.msk.bf16.mxu0 %vm2396_vm1, %v2395_v8  ;;  %v2135_v46 = vcombine.high %v2669_v33, %v2674_v34  ;;  %v795_v44 = vadd.f32 %v794_v39, %v793_v32  ;;  %v808_v47 = vrot.slane %v807_v40, 4  ;;  %v2742_v32 = vld [vmem:[%s3146_s3 + $0x80] sm:$0xff] }
  0xd5   :  { %v828_v30 = vsel %vm46_vm0, %v784_v15, 0.0  ;;  %v785_v27 = vmul.f32 %v777_v41, %v2512_v48  ;;  %944 = vmatprep.subr.bf16.mxu0 %v2133_v2  ;;  %v792_v49 = vadd.f32 %v791_v35, %v790_v6  ;;  %v819_v50 = vrot.slane %v818_v38, 1  ;;  %v2716_v6 = vld [vmem:[%s3146_s3 + $0x180] sm:$0xff] }
  0xd6   :  { %v826_v52 = vrot.slane %v825_v42, 1  ;;  %v398_v53 = vsel %vm95_vm3, %v2678_v20, 0  ;;  %v796_v54 = vrot.slane %v795_v44, 2  ;;  %v809_v55 = vadd.f32 %v808_v47, %v807_v40  ;;  %v876_v58 = vld [vmem:[%s3146_s3 + $0x1e0] sm:$0xff] }
  0xd7   :  { %v829_v48 = vrot.slane %v828_v30, 4  ;;  %v835_v57 = vsel %vm46_vm0, %v785_v27, 0.0  ;;  %v806_v59 = vadd.f32 %v805_v31, %v804_v23  ;;  %v2134_v60 = vcombine.low %v2669_v33, %v2674_v34  ;;  %v2770_v47 = vld [vmem:[%s3146_s3 + $0x220] sm:$0xff] }
  0xd8   :  { %v2144_v61 = vcombine.high %v2697_v21, %v2702_v37  ;;  %v797_v62 = vadd.f32 %v796_v54, %v795_v44  ;;  %v810_v63 = vrot.slane %v809_v55, 2  ;;  %v836_v2 = vrot.slane %v835_v57, 4  ;;  %v2765_v44 = vld [vmem:[%s3146_s3 + $0x200] sm:$0xff] }
  0xd9   :  { %v830_v1 = vadd.f32 %v829_v48, %v828_v30  ;;  %2290 = vmatmul.mubr.msk.bf16.vlgmr.msra.gmra.mrb[8].mxu1 %vm95_vm3, %v2629_v56  ;;  %v843_v10 = vmul.f32 0.25, %v792_v49  ;;  %v820_v11 = vadd.f32 %v819_v50, %v818_v38  ;;  %v827_v12 = vadd.f32 %v826_v52, %v825_v42  ;;  %v867_v54 = vld [vmem:[%s3146_s3 + $0xc0] sm:$0xff] }
  0xda   :  { %2300 = vmatpush3.bf16.xpose.msra.mxu1 %v398_v53  ;;  %2301 = vmatprep.mubr.msk.bf16.mxu1 %vm2396_vm1, %v2395_v8  ;;  %v2143_v56 = vcombine.low %v2697_v21, %v2702_v37  ;;  %v798_v13 = vrot.slane %v797_v62, 1  ;;  %v811_v14 = vadd.f32 %v810_v63, %v809_v55  ;;  %v837_v23 = vadd.f32 %v836_v2, %v835_v57  ;;  %v868_v55 = vld [vmem:[%s3146_s3 + $0xe0] sm:$0xff]  ;;  %v1206_v21 = vld [vmem:[%s3146_s3 + $0x128] sm:$0xff] }
  0xdb   :  { %v831_v19 = vrot.slane %v830_v1, 2  ;;  %2296 = vmatmul.mubr.msk.bf16.vlgmr.msra.gmra.mrb[12].mxu0 %vm95_vm3, %v2636_v22  ;;  %1028 = vmatprep.subr.bf16.mxu1 %v2142_v29  ;;  %v845_v24 = vmul.f32 0.25, %v806_v59  ;;  %v2136_v8 = vcombine.low %v2716_v6, %v2721_v7  ;;  %v2137_v25 = vcombine.high %v2716_v6, %v2721_v7 }
  0xdc   :  { %945 = vmatpush1.bf16.msra.mxu0 %v2132_v18  ;;  %v2397_v22 = vmov 0   ;;  %v799_v29 = vadd.f32 %v798_v13, %v797_v62  ;;  %v812_v26 = vrot.slane %v811_v14, 1  ;;  %v838_v16 = vrot.slane %v837_v23, 2  ;;  %v875_v18 = vld [vmem:[%s3146_s3 + $0x1c0] sm:$0xff]  ;;  %v1205_v13 = vld [vmem:[%s3146_s3 + $0x108] sm:$0xff] }
  0xdd   :  { %976 = vmatprep.mubr.bf16.mxu0 %v2397_v22  ;;  %v832_v28 = vadd.f32 %v831_v19, %v830_v1  ;;  %946 = vmatprep.subr.bf16.mxu0 %v2135_v46  ;;  %v852_v33 = vpack.c.bf16 %v843_v10, %v843_v10  ;;  %v847_v34 = vmul.f32 0.25, %v820_v11  ;;  %v848_v36 = vmul.f32 0.25, %v827_v12  ;;  %v1072_v19 = vld [vmem:[%s3146_s3 + $0x260] sm:$0xff] }
  0xde   :  { %v844_v35 = vmul.f32 0.25, %v799_v29  ;;  %v813_v38 = vadd.f32 %v812_v26, %v811_v14  ;;  %v839_v39 = vadd.f32 %v838_v16, %v837_v23  ;;  %v854_v40 = vpack.c.bf16 %v845_v24, %v845_v24  ;;  %v1071_v14 = vld [vmem:[%s3146_s3 + $0x240] sm:$0xff]  ;;  %v1208_v16 = vld [vmem:[%s3146_s3 + $0x168] sm:$0xff] }
  0xdf   :  { %v833_v17 = vrot.slane %v832_v28, 1  ;;  %v2145_v15 = vcombine.low %v2742_v32, %v2748_v43  ;;  %v2146_v41 = vcombine.high %v2742_v32, %v2748_v43  ;;  %v2139_v31 = vcombine.high %v875_v18, %v876_v58 }
  0xe0   :  { %947 = vmatpush1.bf16.msra.mxu0 %v2134_v60  ;;  %v853_v42 = vpack.c.bf16 %v844_v35, %v844_v35  ;;  %v846_v46 = vmul.f32 0.25, %v813_v38  ;;  %v840_v27 = vrot.slane %v839_v39, 1  ;;  %v885_v49 = vunpack.c.l.b16 %v852_v33  ;;  %v1209_v35 = vld [vmem:[%s3146_s3 + $0x188] sm:$0xff] }
  0xe1   :  { %2302 = vmatmul.mubr.msk.bf16.vlgmr.msra.gmra.mrb[12].mxu1 %vm95_vm3, %v2678_v20  ;;  %948 = vmatprep.subr.bf16.mxu0 %v2137_v25  ;;  %v834_v30 = vadd.f32 %v833_v17, %v832_v28  ;;  %v856_v50 = vpack.c.bf16 %v847_v34, %v847_v34  ;;  %v857_v20 = vpack.c.bf16 %v848_v36, %v848_v36  ;;  %v1207_v28 = vld [vmem:[%s3146_s3 + $0x148] sm:$0xff]  ;;  %v1075_v17 = vld [vmem:[%s3146_s3 + $0x2c0] sm:$0xff] }
  0xe2   :  { %1029 = vmatpush1.bf16.msra.mxu1 %v2141_v45  ;;  %1060 = vmatprep.mubr.bf16.mxu1 %v2397_v22  ;;  %v886_v52 = vunpack.c.l.b16 %v853_v42  ;;  %v855_v53 = vpack.c.bf16 %v846_v46, %v846_v46  ;;  %v841_v51 = vadd.f32 %v840_v27, %v839_v39  ;;  %v887_v45 = vunpack.c.l.b16 %v854_v40  ;;  %v1210_v38 = vld [vmem:[%s3146_s3 + $0x1a8] sm:$0xff]  ;;  %v1076_v39 = vld [vmem:[%s3146_s3 + $0x2e0] sm:$0xff] }
  0xe3   :  { %1030 = vmatprep.subr.bf16.mxu1 %v2144_v61  ;;  %v849_v5 = vmul.f32 0.25, %v834_v30  ;;  %v2138_v48 = vcombine.low %v875_v18, %v876_v58  ;;  %v2151_v57 = vcombine.high %v2765_v44, %v2770_v47  ;;  %v889_v63 = vunpack.c.l.b16 %v856_v50  ;;  %v1073_v18 = vld [vmem:[%s3146_s3 + $0x280] sm:$0xff]  ;;  %v1211_v42 = vld [vmem:[%s3146_s3 + $0x1c8] sm:$0xff] }
  0xe4   :  { %949 = vmatpush1.bf16.msra.mxu0 %v2136_v8  ;;  %v888_v59 = vunpack.c.l.b16 %v855_v53  ;;  %v850_v60 = vmul.f32 0.25, %v841_v51  ;;  %v893_v62 = vsel %vm547_vm4, %v886_v52, %v885_v49  ;;  %v2148_v1 = vcombine.high %v867_v54, %v868_v55  ;;  %v1074_v58 = vld [vmem:[%s3146_s3 + $0x2a0] sm:$0xff]  ;;  %v1212_v46 = vld [vmem:[%s3146_s3 + $0x1e8] sm:$0xff] }
  0xe5   :  { %950 = vmatprep.subr.bf16.mxu0 %v2139_v31  ;;  %v858_v61 = vpack.c.bf16 %v849_v5, %v849_v5  ;;  %v894_v2 = vsel %vm549_vm5, %v887_v45, %v893_v62  ;;  %v890_v7 = vunpack.c.l.b16 %v857_v20  ;;  %v2147_v23 = vcombine.low %v867_v54, %v868_v55  ;;  %v37_v50 = vld [vmem:[%s3147_s2] sm:$0xff]  ;;  %v1375_v52 = vld [vmem:[%s3146_s3 + $0x208] sm:$0xff] }
  0xe6   :  { %1031 = vmatpush1.bf16.msra.mxu1 %v2143_v56  ;;  %v859_v6 = vpack.c.bf16 %v850_v60, %v850_v60  ;;  %v895_v11 = vsel %vm551_vm6, %v888_v59, %v894_v2  ;;  %v2150_v8 = vcombine.low %v2765_v44, %v2770_v47  ;;  %v2160_v32 = vcombine.high %v1205_v13, %v1206_v21  ;;  %v1197_v44 = vld [vmem:[%s3146_s3 + $0x8] sm:$0xff] }
  0xe7   :  { %1032 = vmatprep.subr.bf16.mxu1 %v2146_v41  ;;  %v891_v10 = vunpack.c.l.b16 %v858_v61  ;;  %v896_v12 = vsel %vm553_vm7, %v889_v63, %v895_v11  ;;  %v2153_v26 = vcombine.high %v1071_v14, %v1072_v19  ;;  %v2821_v43 = vpack.c.bf16 %v2441_v3, %v2441_v3  ;;  %v1198_v47 = vld [vmem:[%s3146_s3 + $0x28] sm:$0xff] }
  0xe8   :  { %951 = vmatpush1.bf16.msra.mxu0 %v2138_v48  ;;  %v892_v37 = vunpack.c.l.b16 %v859_v6  ;;  %v897_v56 = vsel %vm555_vm8, %v890_v7, %v896_v12  ;;  %v2159_v33 = vcombine.low %v1205_v13, %v1206_v21  ;;  %v2152_v34 = vcombine.low %v1071_v14, %v1072_v19  ;;  %v1376_v53 = vld [vmem:[%s3146_s3 + $0x228] sm:$0xff] }
  0xe9   :  { %1120 = vmatprep.subr.bf16.mxu0 %v2151_v57  ;;  %v898_v24 = vsel %vm557_vm9, %v891_v10, %v897_v56  ;;  %v2162_v36 = vcombine.high %v1207_v28, %v1208_v16  ;;  %v2155_v3 = vcombine.high %v1073_v18, %v1074_v58  ;;  %v2161_v40 = vcombine.low %v1207_v28, %v1208_v16  ;;  %v1199_v54 = vld [vmem:[%s3146_s3 + $0x48] sm:$0xff]  ;;  %v1500_v28 = vld [vmem:[%s3146_s3 + $0x10] sm:$0xff] }
  0xea   :  { %1033 = vmatpush1.bf16.msra.mxu1 %v2145_v15  ;;  %v899_v25 = vsel %vm559_vm10, %v892_v37, %v898_v24  ;;  %v2154_v15 = vcombine.low %v1073_v18, %v1074_v58  ;;  %v2164_v41 = vcombine.high %v1209_v35, %v1210_v38  ;;  %v2157_v31 = vcombine.high %v1075_v17, %v1076_v39  ;;  %v1200_v55 = vld [vmem:[%s3146_s3 + $0x68] sm:$0xff]  ;;  %v1509_v24 = vld [vmem:[%s3146_s3 + $0x130] sm:$0xff] }
  0xeb   :  { %1034 = vmatprep.subr.bf16.mxu1 %v2148_v1  ;;  %v2811_v29 = vpack.c.b16 %v899_v25, %v899_v25  ;;  %v2163_v30 = vcombine.low %v1209_v35, %v1210_v38  ;;  %v2156_v27 = vcombine.low %v1075_v17, %v1076_v39  ;;  %v2166_v49 = vcombine.high %v1211_v42, %v1212_v46  ;;  %v1377_v59 = vld [vmem:[%s3146_s3 + $0x248] sm:$0xff]  ;;  %v1501_v16 = vld [vmem:[%s3146_s3 + $0x30] sm:$0xff] }
  0xec   :  { %v2169_v20 = vcombine.high %v1197_v44, %v1198_v47  ;;  %v2165_v51 = vcombine.low %v1211_v42, %v1212_v46  ;;  %v2874_v5 = vpack.c.bf16 %v37_v50, %v37_v50  ;;  %v2168_v45 = vcombine.low %v1197_v44, %v1198_v47  ;;  %v1378_v60 = vld [vmem:[%s3146_s3 + $0x268] sm:$0xff]  ;;  %v1510_v18 = vld [vmem:[%s3146_s3 + $0x150] sm:$0xff] }
  0xed   :  { %2140 = vmatmul.mubr.msk.bf16.vlgmr.msra.gmra.mrb[16].mxu0 %vm95_vm3, %v2811_v29  ;;  %v2178_v48 = vcombine.high %v1375_v52, %v1376_v53  ;;  %v2171_v57 = vcombine.high %v1199_v54, %v1200_v55  ;;  %v1201_v61 = vld [vmem:[%s3146_s3 + $0x88] sm:$0xff]  ;;  %v2177_v63 = vcombine.low %v1375_v52, %v1376_v53  ;;  %v2170_v1 = vcombine.low %v1199_v54, %v1200_v55  ;;  %v1511_v58 = vld [vmem:[%s3146_s3 + $0x170] sm:$0xff] }
  0xee   :  { %1035 = vmatpush1.bf16.msra.mxu1 %v2147_v23  ;;  %1121 = vmatpush1.bf16.msra.mxu0 %v2150_v8  ;;  %v1202_v62 = vld [vmem:[%s3146_s3 + $0xa8] sm:$0xff]  ;;  %v2180_v2 = vcombine.high %v1377_v59, %v1378_v60  ;;  %v2179_v13 = vcombine.low %v1377_v59, %v1378_v60  ;;  %v1508_v23 = vld [vmem:[%s3146_s3 + $0x110] sm:$0xff]  ;;  %v1812_v59 = vld [vmem:[%s3146_s3 + $0x138] sm:$0xff] }
  0xef   :  { %1253 = vmatprep.subr.bf16.mxu1 %v2160_v32  ;;  %1122 = vmatprep.subr.bf16.mxu0 %v2153_v26  ;;  %v2173_v6 = vcombine.high %v1201_v61, %v1202_v62  ;;  %v1379_v7 = vld [vmem:[%s3146_s3 + $0x288] sm:$0xff]  ;;  %v2172_v21 = vcombine.low %v1201_v61, %v1202_v62  ;;  %v2187_v26 = vcombine.high %v1508_v23, %v1509_v24  ;;  %v1502_v35 = vld [vmem:[%s3146_s3 + $0x50] sm:$0xff] }
  0xf0   :  { %1152 = vmatprep.mubr.bf16.mxu0 %v2397_v22  ;;  %v1380_v10 = vld [vmem:[%s3146_s3 + $0x2a8] sm:$0xff]  ;;  %v1503_v38 = vld [vmem:[%s3146_s3 + $0x70] sm:$0xff] }
  0xf1   :  { %2149 = vmatmul.mubr.msk.bf16.vlgmr.msra.gmra.mrb[16].mxu1 %vm95_vm3, %v2821_v43  ;;  %v1203_v11 = vld [vmem:[%s3146_s3 + $0xc8] sm:$0xff]  ;;  %v2182_v37 = vcombine.high %v1379_v7, %v1380_v10  ;;  %v2181_v8 = vcombine.low %v1379_v7, %v1380_v10  ;;  %v1512_v17 = vld [vmem:[%s3146_s3 + $0x190] sm:$0xff]  ;;  %v1814_v7 = vld [vmem:[%s3146_s3 + $0x178] sm:$0xff] }
  0xf2   :  { %1254 = vmatpush1.bf16.msra.mxu1 %v2159_v33  ;;  %1285 = vmatprep.mubr.bf16.mxu1 %v2397_v22  ;;  %v1204_v12 = vld [vmem:[%s3146_s3 + $0xe8] sm:$0xff]  ;;  %v1513_v39 = vld [vmem:[%s3146_s3 + $0x1b0] sm:$0xff] }
  0xf3   :  { %1123 = vmatpush1.bf16.msra.mxu0 %v2152_v34  ;;  %1255 = vmatprep.subr.bf16.mxu1 %v2162_v36  ;;  %v2175_v56 = vcombine.high %v1203_v11, %v1204_v12  ;;  %v1381_v14 = vld [vmem:[%s3146_s3 + $0x2c8] sm:$0xff]  ;;  %v2174_v25 = vcombine.low %v1203_v11, %v1204_v12  ;;  %v2186_v34 = vcombine.low %v1508_v23, %v1509_v24  ;;  %v1504_v42 = vld [vmem:[%s3146_s3 + $0x90] sm:$0xff] }
  0xf4   :  { %1124 = vmatprep.subr.bf16.mxu0 %v2155_v3  ;;  %v1382_v19 = vld [vmem:[%s3146_s3 + $0x2e8] sm:$0xff]  ;;  %v2196_v36 = vcombine.high %v1500_v28, %v1501_v16  ;;  %v2189_v3 = vcombine.high %v1510_v18, %v1511_v58  ;;  %v1505_v46 = vld [vmem:[%s3146_s3 + $0xb0] sm:$0xff] }
  0xf5   :  { %v2184_v32 = vcombine.high %v1381_v14, %v1382_v19  ;;  %v2183_v33 = vcombine.low %v1381_v14, %v1382_v19  ;;  %v1514_v44 = vld [vmem:[%s3146_s3 + $0x1d0] sm:$0xff]  ;;  %v2199_v55 = vcombine.low %v1504_v42, %v1505_v46  ;;  %v1816_v14 = vld [vmem:[%s3146_s3 + $0x1b8] sm:$0xff] }
  0xf6   :  { %1256 = vmatpush1.bf16.msra.mxu1 %v2161_v40  ;;  %v2195_v40 = vcombine.low %v1500_v28, %v1501_v16  ;;  %v1515_v47 = vld [vmem:[%s3146_s3 + $0x1f0] sm:$0xff]  ;;  %v1818_v28 = vld [vmem:[%s3146_s3 + $0x1f8] sm:$0xff] }
  0xf7   :  { %1125 = vmatpush1.bf16.msra.mxu0 %v2154_v15  ;;  %1257 = vmatprep.subr.bf16.mxu1 %v2164_v41  ;;  %v2188_v15 = vcombine.low %v1510_v18, %v1511_v58  ;;  %v2198_v41 = vcombine.high %v1502_v35, %v1503_v38  ;;  %v2193_v50 = vcombine.high %v1514_v44, %v1515_v47  ;;  %v1507_v52 = vld [vmem:[%s3146_s3 + $0xf0] sm:$0xff]  ;;  %v1803_v16 = vld [vmem:[%s3146_s3 + $0x18] sm:$0xff] }
  0xf8   :  { %1126 = vmatprep.subr.bf16.mxu0 %v2157_v31  ;;  %v2191_v31 = vcombine.high %v1512_v17, %v1513_v39  ;;  %v1678_v53 = vld [vmem:[%s3146_s3 + $0x210] sm:$0xff]  ;;  %v1804_v18 = vld [vmem:[%s3146_s3 + $0x38] sm:$0xff] }
  0xf9   :  { %v1679_v54 = vld [vmem:[%s3146_s3 + $0x230] sm:$0xff] }
  0xfa   :  { %1258 = vmatpush1.bf16.msra.mxu1 %v2163_v30  ;;  %v2197_v30 = vcombine.low %v1502_v35, %v1503_v38  ;;  %v1680_v60 = vld [vmem:[%s3146_s3 + $0x250] sm:$0xff]  ;;  %v1982_v35 = vld [vmem:[%s3146_s3 + $0x238] sm:$0xff] }
  0xfb   :  { %1127 = vmatpush1.bf16.msra.mxu0 %v2156_v27  ;;  %1259 = vmatprep.subr.bf16.mxu1 %v2166_v49  ;;  %v2190_v27 = vcombine.low %v1512_v17, %v1513_v39  ;;  %v2200_v49 = vcombine.high %v1504_v42, %v1505_v46  ;;  %v1681_v61 = vld [vmem:[%s3146_s3 + $0x270] sm:$0xff]  ;;  %v1805_v38 = vld [vmem:[%s3146_s3 + $0x58] sm:$0xff] }
  0xfc   :  { %1334 = vmatprep.subr.bf16.mxu0 %v2169_v20  ;;  %v1506_v20 = vld [vmem:[%s3146_s3 + $0xd0] sm:$0xff]  ;;  %v1806_v17 = vld [vmem:[%s3146_s3 + $0x78] sm:$0xff] }
  0xfd   :  { %v2201_v62 = vcombine.low %v1506_v20, %v1507_v52  ;;  %v1682_v10 = vld [vmem:[%s3146_s3 + $0x290] sm:$0xff]  ;;  %v1984_v42 = vld [vmem:[%s3146_s3 + $0x278] sm:$0xff] }
  0xfe   :  { %2158 = vmatmul.mubr.msk.bf16.vlgmr.msra.gmra.mrb[20].mxu0 %vm95_vm3, %v2874_v5  ;;  %1260 = vmatpush1.bf16.msra.mxu1 %v2165_v51  ;;  %v2192_v51 = vcombine.low %v1514_v44, %v1515_v47  ;;  %v1683_v11 = vld [vmem:[%s3146_s3 + $0x2b0] sm:$0xff]  ;;  %v1807_v46 = vld [vmem:[%s3146_s3 + $0x98] sm:$0xff] }
  0xff   :  { %1335 = vmatpush1.bf16.msra.mxu0 %v2168_v45  ;;  %1423 = vmatprep.subr.bf16.mxu1 %v2178_v48  ;;  %v2202_v45 = vcombine.high %v1506_v20, %v1507_v52  ;;  %v2205_v48 = vcombine.high %v1678_v53, %v1679_v54  ;;  %v1684_v19 = vld [vmem:[%s3146_s3 + $0x2d0] sm:$0xff]  ;;  %v1808_v44 = vld [vmem:[%s3146_s3 + $0xb8] sm:$0xff] }
 0x100   :  { %1336 = vmatprep.subr.bf16.mxu0 %v2171_v57  ;;  %1366 = vmatprep.mubr.bf16.mxu0 %v2397_v22  ;;  %v1811_v57 = vld [vmem:[%s3146_s3 + $0x118] sm:$0xff]  ;;  %v1685_v23 = vld [vmem:[%s3146_s3 + $0x2f0] sm:$0xff] }
 0x101   :  { %2167 = vmatmul.mubr.msk.bf16.vlgmr.msra.gmra.mrb[20].mxu1 %vm95_vm3, %v2811_v29  ;;  %v2213_v12 = vcombine.low %v1811_v57, %v1812_v59  ;;  %v1986_v20 = vld [vmem:[%s3146_s3 + $0x2b8] sm:$0xff] }
 0x102   :  { %1424 = vmatpush1.bf16.msra.mxu1 %v2177_v63  ;;  %1455 = vmatprep.mubr.bf16.mxu1 %v2397_v22  ;;  %v2204_v63 = vcombine.low %v1678_v53, %v1679_v54  ;;  %v1809_v52 = vld [vmem:[%s3146_s3 + $0xd8] sm:$0xff] }
 0x103   :  { %1337 = vmatpush1.bf16.msra.mxu0 %v2170_v1  ;;  %1425 = vmatprep.subr.bf16.mxu1 %v2180_v2  ;;  %v2214_v1 = vcombine.high %v1811_v57, %v1812_v59  ;;  %v2207_v2 = vcombine.high %v1680_v60, %v1681_v61  ;;  %v1810_v53 = vld [vmem:[%s3146_s3 + $0xf8] sm:$0xff] }
 0x104   :  { %1338 = vmatprep.subr.bf16.mxu0 %v2173_v6  ;;  %v1813_v6 = vld [vmem:[%s3146_s3 + $0x158] sm:$0xff]  ;;  %v2228_v59 = vcombine.low %v1809_v52, %v1810_v53 }
 0x105   :  { %v2215_v24 = vcombine.low %v1813_v6, %v1814_v7 }
 0x106   :  { %1426 = vmatpush1.bf16.msra.mxu1 %v2179_v13  ;;  %v2206_v13 = vcombine.low %v1680_v60, %v1681_v61 }
 0x107   :  { %1339 = vmatpush1.bf16.msra.mxu0 %v2172_v21  ;;  %1427 = vmatprep.subr.bf16.mxu1 %v2182_v37  ;;  %v2216_v21 = vcombine.high %v1813_v6, %v1814_v7  ;;  %v2209_v37 = vcombine.high %v1682_v10, %v1683_v11 }
 0x108   :  { %1340 = vmatprep.subr.bf16.mxu0 %v2175_v56  ;;  %v1815_v56 = vld [vmem:[%s3146_s3 + $0x198] sm:$0xff] }
 0x109   :  { %v2217_v58 = vcombine.low %v1815_v56, %v1816_v14 }
 0x10a   :  { %1428 = vmatpush1.bf16.msra.mxu1 %v2181_v8  ;;  %v2208_v8 = vcombine.low %v1682_v10, %v1683_v11 }
 0x10b   :  { %1341 = vmatpush1.bf16.msra.mxu0 %v2174_v25  ;;  %1429 = vmatprep.subr.bf16.mxu1 %v2184_v32  ;;  %v2218_v25 = vcombine.high %v1815_v56, %v1816_v14  ;;  %v2211_v32 = vcombine.high %v1684_v19, %v1685_v23 }
 0x10c   :  { %1556 = vmatprep.subr.bf16.mxu0 %v2187_v26  ;;  %v1817_v26 = vld [vmem:[%s3146_s3 + $0x1d8] sm:$0xff] }
 0x10d   :  { %v2219_v39 = vcombine.low %v1817_v26, %v1818_v28 }
 0x10e   :  { %2176 = vmatmul.mubr.msk.bf16.vlgmr.msra.gmra.mrb[24].mxu0 %vm95_vm3, %v2821_v43  ;;  %1430 = vmatpush1.bf16.msra.mxu1 %v2183_v33  ;;  %v2210_v33 = vcombine.low %v1684_v19, %v1685_v23 }
 0x10f   :  { %1557 = vmatpush1.bf16.msra.mxu0 %v2186_v34  ;;  %1637 = vmatprep.subr.bf16.mxu1 %v2196_v36  ;;  %v2220_v34 = vcombine.high %v1817_v26, %v1818_v28  ;;  %v2223_v36 = vcombine.high %v1803_v16, %v1804_v18 }
 0x110   :  { %1558 = vmatprep.subr.bf16.mxu0 %v2189_v3  ;;  %1588 = vmatprep.mubr.bf16.mxu0 %v2397_v22  ;;  %v1981_v3 = vld [vmem:[%s3146_s3 + $0x218] sm:$0xff] }
 0x111   :  { %2185 = vmatmul.mubr.msk.bf16.vlgmr.msra.gmra.mrb[24].mxu1 %vm95_vm3, %v2874_v5  ;;  %v2231_v47 = vcombine.low %v1981_v3, %v1982_v35 }
 0x112   :  { %1638 = vmatpush1.bf16.msra.mxu1 %v2195_v40  ;;  %1669 = vmatprep.mubr.bf16.mxu1 %v2397_v22  ;;  %v2222_v40 = vcombine.low %v1803_v16, %v1804_v18 }
 0x113   :  { %1559 = vmatpush1.bf16.msra.mxu0 %v2188_v15  ;;  %1639 = vmatprep.subr.bf16.mxu1 %v2198_v41  ;;  %v2232_v15 = vcombine.high %v1981_v3, %v1982_v35  ;;  %v2225_v41 = vcombine.high %v1805_v38, %v1806_v17 }
 0x114   :  { %1560 = vmatprep.subr.bf16.mxu0 %v2191_v31  ;;  %v1983_v31 = vld [vmem:[%s3146_s3 + $0x258] sm:$0xff] }
 0x115   :  { %v2233_v54 = vcombine.low %v1983_v31, %v1984_v42 }
 0x116   :  { %1640 = vmatpush1.bf16.msra.mxu1 %v2197_v30  ;;  %v2224_v30 = vcombine.low %v1805_v38, %v1806_v17 }
 0x117   :  { %1561 = vmatpush1.bf16.msra.mxu0 %v2190_v27  ;;  %1641 = vmatprep.subr.bf16.mxu1 %v2200_v49  ;;  %v2234_v27 = vcombine.high %v1983_v31, %v1984_v42  ;;  %v2227_v49 = vcombine.high %v1807_v46, %v1808_v44 }
 0x118   :  { %1562 = vmatprep.subr.bf16.mxu0 %v2193_v50  ;;  %v1985_v50 = vld [vmem:[%s3146_s3 + $0x298] sm:$0xff] }
 0x119   :  { %v2235_v57 = vcombine.low %v1985_v50, %v1986_v20 }
 0x11a   :  { %1642 = vmatpush1.bf16.msra.mxu1 %v2199_v55  ;;  %v2226_v55 = vcombine.low %v1807_v46, %v1808_v44 }
 0x11b   :  { %1563 = vmatpush1.bf16.msra.mxu0 %v2192_v51  ;;  %1643 = vmatprep.subr.bf16.mxu1 %v2202_v45  ;;  %v2236_v51 = vcombine.high %v1985_v50, %v1986_v20  ;;  %v2229_v45 = vcombine.high %v1809_v52, %v1810_v53 }
 0x11c   :  { %1726 = vmatprep.subr.bf16.mxu0 %v2205_v48  ;;  %v1988_v48 = vld [vmem:[%s3146_s3 + $0x2f8] sm:$0xff] }
 0x11e   :  { %2194 = vmatmul.mubr.msk.bf16.vlgmr.msra.gmra.mrb[28].mxu0 %vm95_vm3, %v2811_v29  ;;  %1644 = vmatpush1.bf16.msra.mxu1 %v2201_v62 }
 0x11f   :  { %1727 = vmatpush1.bf16.msra.mxu0 %v2204_v63  ;;  %1859 = vmatprep.subr.bf16.mxu1 %v2214_v1 }
 0x120   :  { %1728 = vmatprep.subr.bf16.mxu0 %v2207_v2  ;;  %1758 = vmatprep.mubr.bf16.mxu0 %v2397_v22 }
 0x121   :  { %2203 = vmatmul.mubr.msk.bf16.vlgmr.msra.gmra.mrb[28].mxu1 %vm95_vm3, %v2821_v43 }
 0x122   :  { %1860 = vmatpush1.bf16.msra.mxu1 %v2213_v12  ;;  %1891 = vmatprep.mubr.bf16.mxu1 %v2397_v22 }
 0x123   :  { %1729 = vmatpush1.bf16.msra.mxu0 %v2206_v13  ;;  %1861 = vmatprep.subr.bf16.mxu1 %v2216_v21 }
 0x124   :  { %1730 = vmatprep.subr.bf16.mxu0 %v2209_v37 }
 0x126   :  { %1862 = vmatpush1.bf16.msra.mxu1 %v2215_v24 }
 0x127   :  { %1731 = vmatpush1.bf16.msra.mxu0 %v2208_v8  ;;  %1863 = vmatprep.subr.bf16.mxu1 %v2218_v25 }
 0x128   :  { %1732 = vmatprep.subr.bf16.mxu0 %v2211_v32 }
 0x12a   :  { %1864 = vmatpush1.bf16.msra.mxu1 %v2217_v58 }
 0x12b   :  { %1733 = vmatpush1.bf16.msra.mxu0 %v2210_v33  ;;  %1865 = vmatprep.subr.bf16.mxu1 %v2220_v34 }
 0x12c   :  { %1940 = vmatprep.subr.bf16.mxu0 %v2223_v36 }
 0x12e   :  { %2212 = vmatmul.mubr.msk.bf16.vlgmr.msra.gmra.mrb[32].mxu0 %vm95_vm3, %v2874_v5  ;;  %1866 = vmatpush1.bf16.msra.mxu1 %v2219_v39 }
 0x12f   :  { %1941 = vmatpush1.bf16.msra.mxu0 %v2222_v40  ;;  %2029 = vmatprep.subr.bf16.mxu1 %v2232_v15 }
 0x130   :  { %1942 = vmatprep.subr.bf16.mxu0 %v2225_v41  ;;  %1972 = vmatprep.mubr.bf16.mxu0 %v2397_v22 }
 0x131   :  { %2221 = vmatmul.mubr.msk.bf16.vlgmr.msra.gmra.mrb[32].mxu1 %vm95_vm3, %v2811_v29  ;;  %v1987_v29 = vld [vmem:[%s3146_s3 + $0x2d8] sm:$0xff] }
 0x132   :  { %2030 = vmatpush1.bf16.msra.mxu1 %v2231_v47  ;;  %2061 = vmatprep.mubr.bf16.mxu1 %v2397_v22  ;;  %v2238_v22 = vcombine.high %v1987_v29, %v1988_v48  ;;  %v2237_v60 = vcombine.low %v1987_v29, %v1988_v48 }
 0x133   :  { %1943 = vmatpush1.bf16.msra.mxu0 %v2224_v30  ;;  %2031 = vmatprep.subr.bf16.mxu1 %v2234_v27 }
 0x134   :  { %1944 = vmatprep.subr.bf16.mxu0 %v2227_v49 }
 0x136   :  { %2032 = vmatpush1.bf16.msra.mxu1 %v2233_v54 }
 0x137   :  { %1945 = vmatpush1.bf16.msra.mxu0 %v2226_v55  ;;  %2033 = vmatprep.subr.bf16.mxu1 %v2236_v51 }
 0x138   :  { %1946 = vmatprep.subr.bf16.mxu0 %v2229_v45 }
 0x13a   :  { %2034 = vmatpush1.bf16.msra.mxu1 %v2235_v57 }
 0x13b   :  { %1947 = vmatpush1.bf16.msra.mxu0 %v2228_v59  ;;  %2035 = vmatprep.subr.bf16.mxu1 %v2238_v22 }
 0x13e   :  { %2230 = vmatmul.mubr.msk.bf16.vlgmr.msra.gmra.mrb[36].mxu0 %vm95_vm3, %v2821_v43  ;;  %2036 = vmatpush1.bf16.msra.mxu1 %v2237_v60 }
 0x141   :  { %2239 = vmatmul.mubr.msk.bf16.vlgmr.msra.gmra.mrb[36].mxu1 %vm95_vm3, %v2874_v5 }
 0x196   :  { %v133_v61 = vpop.f32.mrb[0].mxu0 }
 0x197   :  { %v440_v62 = vmul.f32 5.0, %v133_v61  ;;  %v2261_v63 = vpop.f32.mrb[1].mxu0 }
 0x198   :  { %v136_v1 = vpop.f32.mrb[2].mxu0 }
 0x199   :  { %v448_v2 = vmul.f32 1.442695, %v440_v62  ;;  %v2262_v6 = vpop.f32.mrb[3].mxu0 }
 0x19b   :  { %2358 = vpow2.f32 %v448_v2 }
 0x19c   :  { %v176_v7 = vpop.f32.mrb[0].mxu1 }
 0x19d   :  { %v441_v10 = vmul.f32 5.0, %v176_v7  ;;  %v2267_v11 = vpop.f32.mrb[1].mxu1 }
 0x19e   :  { %v179_v12 = vpop.f32.mrb[2].mxu1  ;;  %v219_v13 = vpop.f32.mrb[4].mxu0 }
 0x19f   :  { %v450_v21 = vmul.f32 1.442695, %v441_v10  ;;  %v442_v37 = vmul.f32 5.0, %v219_v13  ;;  %v2268_v56 = vpop.f32.mrb[3].mxu1  ;;  %v2273_v43 = vpop.f32.mrb[5].mxu0 }
 0x1a0   :  { %v222_v14 = vpop.f32.mrb[6].mxu0  ;;  %v1163_v56 = vld [vmem:[%s3148_s4] sm:$0x3]  ;;  %v3090_v43 = vsub.s32 1, %v2444_v4 }
 0x1a1   :  { %2360 = vpow2.f32 %v450_v21  ;;  %v452_v19 = vmul.f32 1.442695, %v442_v37  ;;  %v2274_v5 = vpop.f32.mrb[7].mxu0  ;;  %v1168_v14 = vrot.slane %v1163_v56, %v2451_v9 }
 0x1a2   :  { %v1172_v5 = vrot.slane %v1163_v56, %v3090_v43 }
 0x1a3   :  { %2362 = vpow2.f32 %v452_v19 }
 0x1a4   :  { %v262_v23 = vpop.f32.mrb[4].mxu1 }
 0x1a5   :  { %v2359_v24 = vpop.eup %2358  ;;  %v443_v8 = vmul.f32 5.0, %v262_v23  ;;  %v2279_v25 = vpop.f32.mrb[5].mxu1  ;;  %v1179_v23 = vld [vmem:[%s3149_s5] sm:$0x3] }
 0x1a6   :  { %v265_v32 = vpop.f32.mrb[6].mxu1  ;;  %v305_v26 = vpop.f32.mrb[8].mxu0  ;;  %v465_v28 = vsel %vm464_vm11, %v2359_v24, 0.0 }
 0x1a7   :  { %v454_v16 = vmul.f32 1.442695, %v443_v8  ;;  %v444_v18 = vmul.f32 5.0, %v305_v26  ;;  %v2280_v58 = vpop.f32.mrb[7].mxu1  ;;  %466 = vadd.xlane.f32.xlu0 %v465_v28  ;;  %v2285_v33 = vpop.f32.mrb[9].mxu0 }
 0x1a8   :  { %v308_v34 = vpop.f32.mrb[10].mxu0 }
 0x1a9   :  { %2364 = vpow2.f32 %v454_v16  ;;  %v456_v36 = vmul.f32 1.442695, %v444_v18  ;;  %v2286_v3 = vpop.f32.mrb[11].mxu0  ;;  %v1184_v16 = vrot.slane %v1179_v23, %v2451_v9  ;;  %v1188_v34 = vrot.slane %v1179_v23, %v3090_v43 }
 0x1ab   :  { %v2361_v35 = vpop.eup %2360  ;;  %2366 = vpow2.f32 %v456_v36 }
 0x1ac   :  { %v348_v38 = vpop.f32.mrb[8].mxu1  ;;  %v468_v17 = vsel %vm464_vm11, %v2361_v35, 0.0 }
 0x1ad   :  { %v2363_v39 = vpop.eup %2362  ;;  %v445_v40 = vmul.f32 5.0, %v348_v38  ;;  %469 = vadd.xlane.f32.xlu1 %v468_v17  ;;  %v2291_v15 = vpop.f32.mrb[9].mxu1 }
 0x1ae   :  { %v351_v41 = vpop.f32.mrb[10].mxu1  ;;  %v391_v31 = vpop.f32.mrb[12].mxu0  ;;  %v471_v42 = vsel %vm464_vm11, %v2363_v39, 0.0  ;;  %v1466_v15 = vld [vmem:[%s3148_s4 + $0x2] sm:$0x3] }
 0x1af   :  { %v458_v46 = vmul.f32 1.442695, %v445_v40  ;;  %v446_v44 = vmul.f32 5.0, %v391_v31  ;;  %v2292_v47 = vpop.f32.mrb[11].mxu1  ;;  %472 = vadd.xlane.f32.xlu0 %v471_v42  ;;  %v2297_v30 = vpop.f32.mrb[13].mxu0 }
 0x1b0   :  { %v394_v27 = vpop.f32.mrb[14].mxu0 }
 0x1b1   :  { %2368 = vpow2.f32 %v458_v46  ;;  %v460_v49 = vmul.f32 1.442695, %v446_v44  ;;  %v2298_v50 = vpop.f32.mrb[15].mxu0  ;;  %v1471_v44 = vrot.slane %v1466_v15, %v2451_v9  ;;  %v1475_v27 = vrot.slane %v1466_v15, %v3090_v43 }
 0x1b2   :  { %v1482_v50 = vld [vmem:[%s3149_s5 + $0x2] sm:$0x3] }
 0x1b3   :  { %v2365_v20 = vpop.eup %2364  ;;  %2370 = vpow2.f32 %v460_v49 }
 0x1b4   :  { %v434_v52 = vpop.f32.mrb[12].mxu1  ;;  %v474_v53 = vsel %vm464_vm11, %v2365_v20, 0.0 }
 0x1b5   :  { %v2367_v54 = vpop.eup %2366  ;;  %v447_v55 = vmul.f32 5.0, %v434_v52  ;;  %475 = vadd.xlane.f32.xlu1 %v474_v53  ;;  %v2303_v51 = vpop.f32.mrb[13].mxu1 }
 0x1b6   :  { %v437_v45 = vpop.f32.mrb[14].mxu1  ;;  %v477_v29 = vsel %vm464_vm11, %v2367_v54, 0.0  ;;  %v1487_v51 = vrot.slane %v1482_v50, %v2451_v9 }
 0x1b7   :  { %v462_v48 = vmul.f32 1.442695, %v447_v55  ;;  %v2304_v57 = vpop.f32.mrb[15].mxu1  ;;  %478 = vadd.xlane.f32.xlu0 %v477_v29 }
 0x1b9   :  { %2372 = vpow2.f32 %v462_v48  ;;  %v1491_v48 = vrot.slane %v1482_v50, %v3090_v43 }
 0x1bb   :  { %v2369_v59 = vpop.eup %2368 }
 0x1bc   :  { %v480_v22 = vsel %vm464_vm11, %v2369_v59, 0.0 }
 0x1bd   :  { %v2371_v60 = vpop.eup %2370  ;;  %481 = vadd.xlane.f32.xlu1 %v480_v22 }
 0x1be   :  { %v483_v61 = vsel %vm464_vm11, %v2371_v60, 0.0 }
 0x1bf   :  { %484 = vadd.xlane.f32.xlu0 %v483_v61 }
 0x1c0   :  { %v978_v62 = vpop.f32.mrb[16].mxu0 }
 0x1c1   :  { %v980_v63 = vpop.f32.mrb[17].mxu0 }
 0x1c2   :  { %v982_v2 = vpop.f32.mrb[18].mxu0 }
 0x1c3   :  { %v2373_v1 = vpop.eup %2372  ;;  %v983_v10 = vpop.f32.mrb[19].mxu0 }
 0x1c4   :  { %v1062_v6 = vpop.f32.mrb[16].mxu1  ;;  %v486_v7 = vsel %vm464_vm11, %v2373_v1, 0.0 }
 0x1c5   :  { %v1063_v11 = vadd.f32 %v1062_v6, %v978_v62  ;;  %487 = vadd.xlane.f32.xlu1 %v486_v7  ;;  %v1064_v12 = vpop.f32.mrb[17].mxu1 }
 0x1c6   :  { %v1065_v13 = vadd.f32 %v1064_v12, %v980_v63  ;;  %v1066_v21 = vpop.f32.mrb[18].mxu1 }
 0x1c7   :  { %v1067_v37 = vpop.f32.mrb[19].mxu1  ;;  %v1769_v21 = vld [vmem:[%s3148_s4 + $0x4] sm:$0x3] }
 0x1c8   :  { %v1774_v37 = vrot.slane %v1769_v21, %v2451_v9 }
 0x1d1   :  { %v1154_v19 = vpop.f32.mrb[20].mxu0 }
 0x1d2   :  { %v1161_v24 = vadd.f32 %v1154_v19, %v1063_v11  ;;  %v1156_v8 = vpop.f32.mrb[21].mxu0  ;;  %v1785_v19 = vld [vmem:[%s3149_s5 + $0x4] sm:$0x3] }
 0x1d3   :  { %v1162_v25 = vadd.f32 %v1156_v8, %v1065_v13  ;;  %v1158_v32 = vpop.f32.mrb[22].mxu0 }
 0x1d4   :  { %v1175_v26 = vadd.f32 %v1168_v14, %v1161_v24  ;;  %v1287_v28 = vpop.f32.mrb[20].mxu1  ;;  %v1159_v18 = vpop.f32.mrb[23].mxu0  ;;  %v1778_v14 = vrot.slane %v1769_v21, %v3090_v43 }
 0x1d5   :  { %v1176_v58 = vadd.f32 %v1172_v5, %v1162_v25  ;;  %v1289_v33 = vpop.f32.mrb[21].mxu1 }
 0x1d6   :  { %v1177_v36 = vmax.f32 %v1175_v26, 0.0  ;;  %v1291_v3 = vpop.f32.mrb[22].mxu1  ;;  %v1790_v26 = vrot.slane %v1785_v19, %v2451_v9 }
 0x1d7   :  { %v1178_v35 = vmax.f32 %v1176_v58, 0.0  ;;  %v1292_v38 = vpop.f32.mrb[23].mxu1  ;;  %v1794_v58 = vrot.slane %v1785_v19, %v3090_v43 }
 0x1d8   :  { %v1191_v17 = vmul.f32 %v1184_v16, %v1177_v36 }
 0x1d9   :  { %v1192_v39 = vmul.f32 %v1188_v34, %v1178_v35 }
 0x1db   :  { %v1193_v40 = vadd.f32 %v1192_v39, %v1191_v17  ;;  %v2072_v39 = vld [vmem:[%s3148_s4 + $0x6] sm:$0x3] }
 0x1dd   :  { %1194 = vadd.xlane.f32.xlu0 %v1193_v40 }
 0x1e1   :  { %v1368_v41 = vpop.f32.mrb[24].mxu0 }
 0x1e2   :  { %v1369_v31 = vadd.f32 %v1368_v41, %v1287_v28  ;;  %v1370_v42 = vpop.f32.mrb[25].mxu0 }
 0x1e3   :  { %v1371_v46 = vadd.f32 %v1370_v42, %v1289_v33  ;;  %v1372_v47 = vpop.f32.mrb[26].mxu0  ;;  %v2077_v42 = vrot.slane %v2072_v39, %v2451_v9 }
 0x1e4   :  { %v1457_v30 = vpop.f32.mrb[24].mxu1  ;;  %v1373_v49 = vpop.f32.mrb[27].mxu0  ;;  %v2081_v47 = vrot.slane %v2072_v39, %v3090_v43 }
 0x1e5   :  { %v1464_v20 = vadd.f32 %v1457_v30, %v1369_v31  ;;  %v1459_v52 = vpop.f32.mrb[25].mxu1  ;;  %v2088_v30 = vld [vmem:[%s3149_s5 + $0x6] sm:$0x3] }
 0x1e6   :  { %v1465_v53 = vadd.f32 %v1459_v52, %v1371_v46  ;;  %v1461_v54 = vpop.f32.mrb[26].mxu1 }
 0x1e7   :  { %v1478_v55 = vadd.f32 %v1471_v44, %v1464_v20  ;;  %v1462_v45 = vpop.f32.mrb[27].mxu1  ;;  %v2093_v54 = vrot.slane %v2088_v30, %v2451_v9 }
 0x1e8   :  { %v1479_v29 = vadd.f32 %v1475_v27, %v1465_v53  ;;  %v2097_v45 = vrot.slane %v2088_v30, %v3090_v43  ;;  %v514_v43 = vand.u32 127, %v513_v0 }
 0x1e9   :  { %v1480_v57 = vmax.f32 %v1478_v55, 0.0 }
 0x1ea   :  { %v1481_v59 = vmax.f32 %v1479_v29, 0.0 }
 0x1eb   :  { %v1494_v22 = vmul.f32 %v1487_v51, %v1480_v57 }
 0x1ec   :  { %v1495_v60 = vmul.f32 %v1491_v48, %v1481_v59 }
 0x1ee   :  { %v1496_v61 = vadd.f32 %v1495_v60, %v1494_v22 }
 0x1f0   :  { %1497 = vadd.xlane.f32.xlu1 %v1496_v61 }
 0x1f1   :  { %v1590_v62 = vpop.f32.mrb[28].mxu0 }
 0x1f2   :  { %v1592_v63 = vpop.f32.mrb[29].mxu0 }
 0x1f3   :  { %v1594_v1 = vpop.f32.mrb[30].mxu0 }
 0x1f4   :  { %v1595_v2 = vpop.f32.mrb[31].mxu0  ;;  %v1671_v6 = vpop.f32.mrb[28].mxu1 }
 0x1f5   :  { %v1672_v7 = vadd.f32 %v1671_v6, %v1590_v62  ;;  %v1673_v10 = vpop.f32.mrb[29].mxu1 }
 0x1f6   :  { %v1674_v11 = vadd.f32 %v1673_v10, %v1592_v63  ;;  %v1675_v12 = vpop.f32.mrb[30].mxu1 }
 0x1f7   :  { %v1676_v13 = vpop.f32.mrb[31].mxu1 }
 0x1f8   :  { %v517_v13 = vsub.s32 %v514_v43, %v2444_v4 }
 0x201   :  { %v1760_v56 = vpop.f32.mrb[32].mxu0 }
 0x202   :  { %v1767_v5 = vadd.f32 %v1760_v56, %v1672_v7  ;;  %v1762_v23 = vpop.f32.mrb[33].mxu0 }
 0x203   :  { %v1768_v24 = vadd.f32 %v1762_v23, %v1674_v11  ;;  %v1764_v8 = vpop.f32.mrb[34].mxu0 }
 0x204   :  { %v1781_v25 = vadd.f32 %v1774_v37, %v1767_v5  ;;  %v1893_v32 = vpop.f32.mrb[32].mxu1  ;;  %v1765_v28 = vpop.f32.mrb[35].mxu0 }
 0x205   :  { %v1782_v16 = vadd.f32 %v1778_v14, %v1768_v24  ;;  %v1895_v18 = vpop.f32.mrb[33].mxu1 }
 0x206   :  { %v1783_v33 = vmax.f32 %v1781_v25, 0.0  ;;  %v1897_v34 = vpop.f32.mrb[34].mxu1 }
 0x207   :  { %v1784_v36 = vmax.f32 %v1782_v16, 0.0  ;;  %v1898_v3 = vpop.f32.mrb[35].mxu1 }
 0x208   :  { %v1797_v35 = vmul.f32 %v1790_v26, %v1783_v33 }
 0x209   :  { %v1798_v38 = vmul.f32 %v1794_v58, %v1784_v36 }
 0x20b   :  { %v1799_v17 = vadd.f32 %v1798_v38, %v1797_v35 }
 0x20d   :  { %1800 = vadd.xlane.f32.xlu0 %v1799_v17 }
 0x211   :  { %v1974_v40 = vpop.f32.mrb[36].mxu0 }
 0x212   :  { %v1975_v15 = vadd.f32 %v1974_v40, %v1893_v32  ;;  %v1976_v41 = vpop.f32.mrb[37].mxu0 }
 0x213   :  { %v1977_v31 = vadd.f32 %v1976_v41, %v1895_v18  ;;  %v1978_v46 = vpop.f32.mrb[38].mxu0 }
 0x214   :  { %v2063_v44 = vpop.f32.mrb[36].mxu1  ;;  %v1979_v27 = vpop.f32.mrb[39].mxu0 }
 0x215   :  { %v2070_v49 = vadd.f32 %v2063_v44, %v1975_v15  ;;  %v2065_v50 = vpop.f32.mrb[37].mxu1  ;;  %v2107_v27 = vstv %s3150_s6 }
 0x216   :  { %v2071_v20 = vadd.f32 %v2065_v50, %v1977_v31  ;;  %v2067_v52 = vpop.f32.mrb[38].mxu1 }
 0x217   :  { %v2084_v53 = vadd.f32 %v2077_v42, %v2070_v49  ;;  %v2068_v55 = vpop.f32.mrb[39].mxu1 }
 0x218   :  { %v2085_v51 = vadd.f32 %v2081_v47, %v2071_v20 }
 0x219   :  { %v2086_v29 = vmax.f32 %v2084_v53, 0.0 }
 0x21a   :  { %v2087_v48 = vmax.f32 %v2085_v51, 0.0 }
 0x21b   :  { %v2100_v57 = vmul.f32 %v2093_v54, %v2086_v29 }
 0x21c   :  { %v2101_v59 = vmul.f32 %v2097_v45, %v2087_v48 }
 0x21e   :  { %v2102_v22 = vadd.f32 %v2101_v59, %v2100_v57 }
 0x220   :  { %2103 = vadd.xlane.f32.xlu1 %v2102_v22 }
 0x234   :  { %v467_v60 = vpop.xlane.xlu0 %466 }
 0x23a   :  { %v470_v61 = vpop.xlane.xlu1 %469 }
 0x23b   :  { %2374 = vlog2.f32 %v470_v61 }
 0x23c   :  { %v473_v62 = vpop.xlane.xlu0 %472  ;;  %2376 = vlog2.f32 %v467_v60 }
 0x23d   :  { %2378 = vlog2.f32 %v473_v62 }
 0x242   :  { %v476_v63 = vpop.xlane.xlu1 %475 }
 0x243   :  { %2380 = vlog2.f32 %v476_v63 }
 0x244   :  { %v479_v1 = vpop.xlane.xlu0 %478 }
 0x245   :  { %2382 = vlog2.f32 %v479_v1  ;;  %v2375_v2 = vpop.eup %2374 }
 0x246   :  { %v2377_v7 = vpop.eup %2376  ;;  %v492_v11 = vmul.f32 0.6931472, %v2375_v2 }
 0x247   :  { %v2379_v10 = vpop.eup %2378  ;;  %v490_v21 = vmul.f32 0.6931472, %v2377_v7 }
 0x248   :  { %v494_v37 = vmul.f32 0.6931472, %v2379_v10  ;;  %v522_v14 = vrot.slane %v492_v11, %v517_v13 }
 0x249   :  { %v518_v23 = vrot.slane %v490_v21, %v517_v13 }
 0x24a   :  { %v482_v9 = vpop.xlane.xlu1 %481  ;;  %v526_v8 = vrot.slane %v494_v37, %v517_v13 }
 0x24b   :  { %2384 = vlog2.f32 %v482_v9  ;;  %v548_v0 = vsel %vm547_vm4, %v522_v14, %v518_v23 }
 0x24c   :  { %v485_v6 = vpop.xlane.xlu0 %484  ;;  %v550_v16 = vsel %vm549_vm5, %v526_v8, %v548_v0 }
 0x24d   :  { %2386 = vlog2.f32 %v485_v6  ;;  %v2381_v12 = vpop.eup %2380 }
 0x24e   :  { %v496_v19 = vmul.f32 0.6931472, %v2381_v12 }
 0x24f   :  { %v2383_v56 = vpop.eup %2382 }
 0x250   :  { %v498_v25 = vmul.f32 0.6931472, %v2383_v56  ;;  %v530_v32 = vrot.slane %v496_v19, %v517_v13 }
 0x252   :  { %v488_v5 = vpop.xlane.xlu1 %487  ;;  %v534_v18 = vrot.slane %v498_v25, %v517_v13  ;;  %v552_v58 = vsel %vm551_vm6, %v530_v32, %v550_v16 }
 0x253   :  { %2388 = vlog2.f32 %v488_v5 }
 0x254   :  { %v554_v3 = vsel %vm553_vm7, %v534_v18, %v552_v58 }
 0x255   :  { %v2385_v24 = vpop.eup %2384 }
 0x256   :  { %v500_v26 = vmul.f32 0.6931472, %v2385_v24 }
 0x257   :  { %v2387_v28 = vpop.eup %2386 }
 0x258   :  { %v502_v4 = vmul.f32 0.6931472, %v2387_v28  ;;  %v538_v33 = vrot.slane %v500_v26, %v517_v13 }
 0x25a   :  { %v542_v36 = vrot.slane %v502_v4, %v517_v13  ;;  %v556_v38 = vsel %vm555_vm8, %v538_v33, %v554_v3 }
 0x25c   :  { %v558_v39 = vsel %vm557_vm9, %v542_v36, %v556_v38 }
 0x25d   :  { %v2389_v34 = vpop.eup %2388 }
 0x25e   :  { %v504_v35 = vmul.f32 0.6931472, %v2389_v34 }
 0x260   :  { %v546_v17 = vrot.slane %v504_v35, %v517_v13 }
 0x262   :  { %v560_v40 = vsel %vm559_vm10, %v546_v17, %v558_v39 }
 0x263   :  { %v563_v15 = vsel %vm562_vm12, %v560_v40, 0.0 }
 0x264   :  { %564 = vadd.xlane.f32.xlu0 %v563_v15 }
 0x26a   :  { %v1195_v41 = vpop.xlane.xlu0 %1194 }
 0x27d   :  { %v1498_v31 = vpop.xlane.xlu1 %1497 }
 0x27e   :  { %v1499_v46 = vadd.f32 %v1498_v31, %v1195_v41 }
 0x29a   :  { %v1801_v42 = vpop.xlane.xlu0 %1800 }
 0x29b   :  { %v1802_v47 = vadd.f32 %v1801_v42, %v1499_v46 }
 0x2ad   :  { %v2104_v44 = vpop.xlane.xlu1 %2103 }
 0x2ae   :  { %v2105_v30 = vadd.f32 %v2104_v44, %v1802_v47 }
 0x2b0   :  { %v2108_v49 = vadd.f32 %v2107_v27, %v2105_v30 }
 0x2b2   :  { %v2240_v50 = vmul.f32 -1.442695, %v2108_v49 }
 0x2b4   :  { %2390 = vpow2.f32 %v2240_v50 }
 0x2be   :  { %v2391_v20 = vpop.eup %2390 }
 0x2bf   :  { %v2112_v52 = vadd.f32 1.0, %v2391_v20 }
 0x2c1   :  { %2392 = vrcp.f32 %v2112_v52 }
 0x2cb   :  { %v2393_v55 = vpop.eup %2392 }
 0x2f1   :  { %v565_v53 = vpop.xlane.xlu0 %564 }
 0x2f2   :  { %v2131_v54 = vadd.f32 -20.0, %v565_v53 }
 0x2f4   :  { %v2116_v51 = vsel %vm2115_vm13, %v2393_v55, %v2131_v54 }
 0x2f5   :  { %2118 = vst.msk [vmem:[%s3151_s7] sm:$0xff] %vm2117_vm14, %v2116_v51 }

</bundles_post_ra>
